<compile_context>
chip_gen: v7x
topology: tpu7x:2x2x1
jax: 0.10.0
libtpu: 0.0.40
codegen_flags: <defaults>
</compile_context>

<pallas_src>
import jax
import jax.numpy as jnp
from jax.experimental import pallas as pl
from jax.experimental.pallas import tpu as pltpu

BN_EPS = 1e-5
_VMEM_LIMIT = 64 * 1024 * 1024


def _pick_tile_h(H, W, Cpad, budget_bytes=4 << 20):
    """Largest row-tile height dividing H whose f32 conv tile stays modest."""
    best = H
    for th in (8, 16, 32, 64, 128):
        if H % th == 0 and th * W * Cpad * 4 <= budget_bytes:
            best = th
    return best


def _make_conv_stats_kernel(TH, W, Cin, Cpad):
    # Pass 1: conv-as-9-shifted-matmuls + per-tile BN partial sums.
    def kernel(x_ref, w_ref, conv_ref, st_ref):
        xt = x_ref[0]                                   # (TH+2, W+2, Cin) bf16
        acc = jnp.zeros((TH * W, Cpad), jnp.float32)
        for ky in range(3):
            for kx in range(3):
                patch = xt[ky:ky + TH, kx:kx + W, :]    # (TH, W, Cin)
                patch = patch.reshape(TH * W, Cin)
                acc = acc + jnp.dot(patch, w_ref[ky * 3 + kx],
                                    preferred_element_type=jnp.float32)
        conv_ref[0] = acc.reshape(TH, W, Cpad).astype(conv_ref.dtype)
        s0 = jnp.sum(acc, axis=0, keepdims=True)        # (1, Cpad)
        s1 = jnp.sum(acc * acc, axis=0, keepdims=True)  # (1, Cpad)
        st_ref[0] = jnp.concatenate([s0, s1], axis=0).astype(st_ref.dtype)
    return kernel


def _make_bn_relu_pool_kernel(TH, Wh, Cpad):
    # Pass 2: per-channel affine (folded BN) + ReLU, with fused 2x2 max-pool.
    # Input view packs adjacent W columns into the lane dim: (TH, Wh, 2*Cpad).
    def kernel(c_ref, sc_ref, sh_ref, enc_ref, pool_ref):
        y = c_ref[0] * sc_ref[...] + sh_ref[...]        # (TH, Wh, 2*Cpad)
        y = jnp.maximum(y, 0.0)                         # ReLU
        enc_ref[0] = y.astype(enc_ref.dtype)
        # W-direction pool: even/odd columns are the two aligned lane halves.
        pw = jnp.maximum(y[:, :, :Cpad], y[:, :, Cpad:])        # (TH, Wh, Cpad)
        # H-direction pool: split the leading dim only (layout-safe reshape).
        ph = pw.reshape(TH // 2, 2, Wh, Cpad)
        pool_ref[0] = jnp.max(ph, axis=1).astype(pool_ref.dtype)
    return kernel


def down_forward(x_nchw, conv_w, bn_gamma, bn_beta):
    N, Cin, H, W = x_nchw.shape
    Cout = conv_w.shape[0]
    assert H % 2 == 0 and W % 2 == 0

    Cpad = ((Cout + 127) // 128) * 128                  # lane-dense channel pad
    TH = _pick_tile_h(H, W, Cpad)
    nT = H // TH
    nM = N * nT
    Wh = W // 2

    # ---- glue: NCHW -> NHWC (bf16), pad=1, overlapping row tiles (halo=2) ----
    x = jnp.transpose(x_nchw, (0, 2, 3, 1)).astype(jnp.bfloat16)
    xp = jnp.pad(x, ((0, 0), (1, 1), (1, 1), (0, 0)))
    x_tiles = jnp.stack([xp[:, t * TH:t * TH + TH + 2] for t in range(nT)],
                        axis=1).reshape(nM, TH + 2, W + 2, Cin)

    # torch weight (Cout, Cin, 3, 3) -> (9, Cin, Cpad), zero-padded, bf16
    w = jnp.transpose(conv_w, (2, 3, 1, 0)).reshape(9, Cin, Cout)
    w = jnp.pad(w, ((0, 0), (0, 0), (0, Cpad - Cout))).astype(jnp.bfloat16)

    # ---- Pallas pass 1: conv + BN partial statistics ----
    conv_t, pstats = pl.pallas_call(
        _make_conv_stats_kernel(TH, W, Cin, Cpad),
        out_shape=(
            jax.ShapeDtypeStruct((nM, TH, W, Cpad), jnp.float32),
            jax.ShapeDtypeStruct((nM, 2, Cpad), jnp.float32),
        ),
        grid=(nM,),
        in_specs=[
            pl.BlockSpec((1, TH + 2, W + 2, Cin), lambda i: (i, 0, 0, 0)),
            pl.BlockSpec((9, Cin, Cpad), lambda i: (0, 0, 0)),
        ],
        out_specs=(
            pl.BlockSpec((1, TH, W, Cpad), lambda i: (i, 0, 0, 0)),
            pl.BlockSpec((1, 2, Cpad), lambda i: (i, 0, 0)),
        ),
        compiler_params=pltpu.CompilerParams(
            dimension_semantics=("parallel",),
            vmem_limit_bytes=_VMEM_LIMIT),
    )(x_tiles, w)

    # ---- exact batch statistics (tiny XLA reduce over per-tile partials) ----
    s = jnp.sum(pstats, axis=0)                         # (2, Cpad) f32
    cnt = jnp.float32(N * H * W)
    mean = s[0] / cnt
    var = jnp.maximum(s[1] / cnt - mean * mean, 0.0)
    g = jnp.pad(bn_gamma.astype(jnp.float32), (0, Cpad - Cout))
    b = jnp.pad(bn_beta.astype(jnp.float32), (0, Cpad - Cout))
    scale = g * jax.lax.rsqrt(var + BN_EPS)             # BN folded to affine
    shift = b - mean * scale
    scale2 = jnp.tile(scale, 2)[None, :]                # (1, 2*Cpad)
    shift2 = jnp.tile(shift, 2)[None, :]

    # Free contiguous reshape: pair adjacent W columns into the lane dim.
    conv_p = conv_t.reshape(nM, TH, Wh, 2 * Cpad)

    # ---- Pallas pass 2: BN affine + ReLU + fused 2x2 max-pool ----
    enc_p, pool_t = pl.pallas_call(
        _make_bn_relu_pool_kernel(TH, Wh, Cpad),
        out_shape=(
            jax.ShapeDtypeStruct((nM, TH, Wh, 2 * Cpad), jnp.float32),
            jax.ShapeDtypeStruct((nM, TH // 2, Wh, Cpad), jnp.float32),
        ),
        grid=(nM,),
        in_specs=[
            pl.BlockSpec((1, TH, Wh, 2 * Cpad), lambda i: (i, 0, 0, 0)),
            pl.BlockSpec((1, 2 * Cpad), lambda i: (0, 0)),
            pl.BlockSpec((1, 2 * Cpad), lambda i: (0, 0)),
        ],
        out_specs=(
            pl.BlockSpec((1, TH, Wh, 2 * Cpad), lambda i: (i, 0, 0, 0)),
            pl.BlockSpec((1, TH // 2, Wh, Cpad), lambda i: (i, 0, 0, 0)),
        ),
        compiler_params=pltpu.CompilerParams(
            dimension_semantics=("parallel",),
            vmem_limit_bytes=_VMEM_LIMIT),
    )(conv_p, scale2, shift2)

    # ---- back to NCHW (PyTorch interface) ----
    # TODO(synk): the NCHW interface forces one layout transpose per output;
    # a fully NHWC pipeline at the JAX level would drop these copies.
    encoded_nhwc = enc_p.reshape(N, H, W, Cpad)[..., :Cout]
    pooled_nhwc = pool_t.reshape(N, H // 2, Wh, Cpad)[..., :Cout]
    encoded = jnp.transpose(encoded_nhwc, (0, 3, 1, 2))
    down = jnp.transpose(pooled_nhwc, (0, 3, 1, 2))
    return down, encoded


def _reference(x, conv_w, gamma, beta):
    y = jax.lax.conv_general_dilated(
        x, conv_w, window_strides=(1, 1), padding="SAME",
        dimension_numbers=("NCHW", "OIHW", "NCHW"))
    mean = jnp.mean(y, axis=(0, 2, 3), keepdims=True)
    var = jnp.mean(jnp.square(y - mean), axis=(0, 2, 3), keepdims=True)
    y = (y - mean) / jnp.sqrt(var + BN_EPS)
    y = y * gamma.reshape(1, -1, 1, 1) + beta.reshape(1, -1, 1, 1)
    enc = jnp.maximum(y, 0.0)
    N, C, H, W = enc.shape
    down = enc.reshape(N, C, H // 2, 2, W // 2, 2).max(axis=(3, 5))
    return down, enc


if __name__ == "__main__":
    key = jax.random.PRNGKey(0)
    k_x, k_w = jax.random.split(key)
    N, Cin, Cout, H, W = 2, 4, 8, 16, 16

    x = jax.random.normal(k_x, (N, Cin, H, W), dtype=jnp.float32)
    conv_w = 0.1 * jax.random.normal(k_w, (Cout, Cin, 3, 3), dtype=jnp.float32)
    gamma = jnp.ones((Cout,), jnp.float32)   # BatchNorm2d default weight
    beta = jnp.zeros((Cout,), jnp.float32)   # BatchNorm2d default bias

    down, encoded = jax.jit(down_forward)(x, conv_w, gamma, beta)
    jax.block_until_ready((down, encoded))

    ref_down, ref_enc = _reference(x, conv_w, gamma, beta)
    assert encoded.shape == (N, Cout, H, W)
    assert down.shape == (N, Cout, H // 2, W // 2)
    assert jnp.allclose(encoded, ref_enc, atol=2e-2, rtol=2e-2)
    assert jnp.allclose(down, ref_down, atol=2e-2, rtol=2e-2)
    print("KERNEL_OK")
</pallas_src>

<mosaic_0001>
module attributes {stable_mosaic.version = 11 : i64} {
  func.func @kernel(%arg0: i32, %arg1: memref<1x18x18x4xbf16, #tpu.memory_space<vmem>>, %arg2: memref<9x4x128xbf16, #tpu.memory_space<vmem>>, %arg3: memref<1x16x16x128xf32, #tpu.memory_space<vmem>>, %arg4: memref<1x2x128xf32, #tpu.memory_space<vmem>>) attributes {dimension_semantics = [#tpu.dimension_semantics<parallel>], iteration_bounds = array<i64: 2>, scalar_prefetch = 0 : i64, scratch_operands = 0 : i64, tpu.core_type = #tpu.core_type<tc>, window_params = [{transform_indices = @transform_0, window_bounds = array<i64: 1, 18, 18, 4>}, {pipeline_mode = #tpu.pipeline_mode<synchronous>, transform_indices = @transform_1, window_bounds = array<i64: 9, 4, 128>}, {transform_indices = @transform_2, window_bounds = array<i64: 1, 16, 16, 128>}, {transform_indices = @transform_3, window_bounds = array<i64: 1, 2, 128>}]} {
    %c0 = arith.constant 0 : index
    %c0_0 = arith.constant 0 : index
    %c0_1 = arith.constant 0 : index
    %c0_2 = arith.constant 0 : index
    %0 = vector.load %arg1[%c0, %c0_0, %c0_1, %c0_2] : memref<1x18x18x4xbf16, #tpu.memory_space<vmem>>, vector<1x18x18x4xbf16>
    %1 = vector.shape_cast %0 : vector<1x18x18x4xbf16> to vector<18x18x4xbf16>
    %cst = arith.constant 0.000000e+00 : f32
    %2 = vector.broadcast %cst : f32 to vector<256x128xf32>
    %3 = vector.extract_strided_slice %1 {offsets = [0, 0, 0], sizes = [16, 16, 4], strides = [1, 1, 1]} : vector<18x18x4xbf16> to vector<16x16x4xbf16>
    %4 = vector.shape_cast %3 : vector<16x16x4xbf16> to vector<256x4xbf16>
    %c0_3 = arith.constant 0 : index
    %c0_4 = arith.constant 0 : index
    %c0_5 = arith.constant 0 : index
    %5 = vector.load %arg2[%c0_3, %c0_4, %c0_5] : memref<9x4x128xbf16, #tpu.memory_space<vmem>>, vector<1x4x128xbf16>
    %6 = vector.shape_cast %5 : vector<1x4x128xbf16> to vector<4x128xbf16>
    %cst_6 = arith.constant dense<0.000000e+00> : vector<256x128xf32>
    %7 = tpu.matmul %4, %6, %cst_6 {dimension_numbers = #tpu.dot_dimension_numbers<[1], [0], [0], [1], [0, 0, 1, 1], [], []>} : vector<256x4xbf16>, vector<4x128xbf16>, vector<256x128xf32> -> vector<256x128xf32>
    %8 = arith.addf %2, %7 : vector<256x128xf32>
    %9 = vector.extract_strided_slice %1 {offsets = [0, 1, 0], sizes = [16, 16, 4], strides = [1, 1, 1]} : vector<18x18x4xbf16> to vector<16x16x4xbf16>
    %10 = vector.shape_cast %9 : vector<16x16x4xbf16> to vector<256x4xbf16>
    %c1 = arith.constant 1 : index
    %c0_7 = arith.constant 0 : index
    %c0_8 = arith.constant 0 : index
    %11 = vector.load %arg2[%c1, %c0_7, %c0_8] : memref<9x4x128xbf16, #tpu.memory_space<vmem>>, vector<1x4x128xbf16>
    %12 = vector.shape_cast %11 : vector<1x4x128xbf16> to vector<4x128xbf16>
    %cst_9 = arith.constant dense<0.000000e+00> : vector<256x128xf32>
    %13 = tpu.matmul %10, %12, %cst_9 {dimension_numbers = #tpu.dot_dimension_numbers<[1], [0], [0], [1], [0, 0, 1, 1], [], []>} : vector<256x4xbf16>, vector<4x128xbf16>, vector<256x128xf32> -> vector<256x128xf32>
    %14 = arith.addf %8, %13 : vector<256x128xf32>
    %15 = vector.extract_strided_slice %1 {offsets = [0, 2, 0], sizes = [16, 16, 4], strides = [1, 1, 1]} : vector<18x18x4xbf16> to vector<16x16x4xbf16>
    %16 = vector.shape_cast %15 : vector<16x16x4xbf16> to vector<256x4xbf16>
    %c2 = arith.constant 2 : index
    %c0_10 = arith.constant 0 : index
    %c0_11 = arith.constant 0 : index
    %17 = vector.load %arg2[%c2, %c0_10, %c0_11] : memref<9x4x128xbf16, #tpu.memory_space<vmem>>, vector<1x4x128xbf16>
    %18 = vector.shape_cast %17 : vector<1x4x128xbf16> to vector<4x128xbf16>
    %cst_12 = arith.constant dense<0.000000e+00> : vector<256x128xf32>
    %19 = tpu.matmul %16, %18, %cst_12 {dimension_numbers = #tpu.dot_dimension_numbers<[1], [0], [0], [1], [0, 0, 1, 1], [], []>} : vector<256x4xbf16>, vector<4x128xbf16>, vector<256x128xf32> -> vector<256x128xf32>
    %20 = arith.addf %14, %19 : vector<256x128xf32>
    %21 = vector.extract_strided_slice %1 {offsets = [1, 0, 0], sizes = [16, 16, 4], strides = [1, 1, 1]} : vector<18x18x4xbf16> to vector<16x16x4xbf16>
    %22 = vector.shape_cast %21 : vector<16x16x4xbf16> to vector<256x4xbf16>
    %c3 = arith.constant 3 : index
    %c0_13 = arith.constant 0 : index
    %c0_14 = arith.constant 0 : index
    %23 = vector.load %arg2[%c3, %c0_13, %c0_14] : memref<9x4x128xbf16, #tpu.memory_space<vmem>>, vector<1x4x128xbf16>
    %24 = vector.shape_cast %23 : vector<1x4x128xbf16> to vector<4x128xbf16>
    %cst_15 = arith.constant dense<0.000000e+00> : vector<256x128xf32>
    %25 = tpu.matmul %22, %24, %cst_15 {dimension_numbers = #tpu.dot_dimension_numbers<[1], [0], [0], [1], [0, 0, 1, 1], [], []>} : vector<256x4xbf16>, vector<4x128xbf16>, vector<256x128xf32> -> vector<256x128xf32>
    %26 = arith.addf %20, %25 : vector<256x128xf32>
    %27 = vector.extract_strided_slice %1 {offsets = [1, 1, 0], sizes = [16, 16, 4], strides = [1, 1, 1]} : vector<18x18x4xbf16> to vector<16x16x4xbf16>
    %28 = vector.shape_cast %27 : vector<16x16x4xbf16> to vector<256x4xbf16>
    %c4 = arith.constant 4 : index
    %c0_16 = arith.constant 0 : index
    %c0_17 = arith.constant 0 : index
    %29 = vector.load %arg2[%c4, %c0_16, %c0_17] : memref<9x4x128xbf16, #tpu.memory_space<vmem>>, vector<1x4x128xbf16>
    %30 = vector.shape_cast %29 : vector<1x4x128xbf16> to vector<4x128xbf16>
    %cst_18 = arith.constant dense<0.000000e+00> : vector<256x128xf32>
    %31 = tpu.matmul %28, %30, %cst_18 {dimension_numbers = #tpu.dot_dimension_numbers<[1], [0], [0], [1], [0, 0, 1, 1], [], []>} : vector<256x4xbf16>, vector<4x128xbf16>, vector<256x128xf32> -> vector<256x128xf32>
    %32 = arith.addf %26, %31 : vector<256x128xf32>
    %33 = vector.extract_strided_slice %1 {offsets = [1, 2, 0], sizes = [16, 16, 4], strides = [1, 1, 1]} : vector<18x18x4xbf16> to vector<16x16x4xbf16>
    %34 = vector.shape_cast %33 : vector<16x16x4xbf16> to vector<256x4xbf16>
    %c5 = arith.constant 5 : index
    %c0_19 = arith.constant 0 : index
    %c0_20 = arith.constant 0 : index
    %35 = vector.load %arg2[%c5, %c0_19, %c0_20] : memref<9x4x128xbf16, #tpu.memory_space<vmem>>, vector<1x4x128xbf16>
    %36 = vector.shape_cast %35 : vector<1x4x128xbf16> to vector<4x128xbf16>
    %cst_21 = arith.constant dense<0.000000e+00> : vector<256x128xf32>
    %37 = tpu.matmul %34, %36, %cst_21 {dimension_numbers = #tpu.dot_dimension_numbers<[1], [0], [0], [1], [0, 0, 1, 1], [], []>} : vector<256x4xbf16>, vector<4x128xbf16>, vector<256x128xf32> -> vector<256x128xf32>
    %38 = arith.addf %32, %37 : vector<256x128xf32>
    %39 = vector.extract_strided_slice %1 {offsets = [2, 0, 0], sizes = [16, 16, 4], strides = [1, 1, 1]} : vector<18x18x4xbf16> to vector<16x16x4xbf16>
    %40 = vector.shape_cast %39 : vector<16x16x4xbf16> to vector<256x4xbf16>
    %c6 = arith.constant 6 : index
    %c0_22 = arith.constant 0 : index
    %c0_23 = arith.constant 0 : index
    %41 = vector.load %arg2[%c6, %c0_22, %c0_23] : memref<9x4x128xbf16, #tpu.memory_space<vmem>>, vector<1x4x128xbf16>
    %42 = vector.shape_cast %41 : vector<1x4x128xbf16> to vector<4x128xbf16>
    %cst_24 = arith.constant dense<0.000000e+00> : vector<256x128xf32>
    %43 = tpu.matmul %40, %42, %cst_24 {dimension_numbers = #tpu.dot_dimension_numbers<[1], [0], [0], [1], [0, 0, 1, 1], [], []>} : vector<256x4xbf16>, vector<4x128xbf16>, vector<256x128xf32> -> vector<256x128xf32>
    %44 = arith.addf %38, %43 : vector<256x128xf32>
    %45 = vector.extract_strided_slice %1 {offsets = [2, 1, 0], sizes = [16, 16, 4], strides = [1, 1, 1]} : vector<18x18x4xbf16> to vector<16x16x4xbf16>
    %46 = vector.shape_cast %45 : vector<16x16x4xbf16> to vector<256x4xbf16>
    %c7 = arith.constant 7 : index
    %c0_25 = arith.constant 0 : index
    %c0_26 = arith.constant 0 : index
    %47 = vector.load %arg2[%c7, %c0_25, %c0_26] : memref<9x4x128xbf16, #tpu.memory_space<vmem>>, vector<1x4x128xbf16>
    %48 = vector.shape_cast %47 : vector<1x4x128xbf16> to vector<4x128xbf16>
    %cst_27 = arith.constant dense<0.000000e+00> : vector<256x128xf32>
    %49 = tpu.matmul %46, %48, %cst_27 {dimension_numbers = #tpu.dot_dimension_numbers<[1], [0], [0], [1], [0, 0, 1, 1], [], []>} : vector<256x4xbf16>, vector<4x128xbf16>, vector<256x128xf32> -> vector<256x128xf32>
    %50 = arith.addf %44, %49 : vector<256x128xf32>
    %51 = vector.extract_strided_slice %1 {offsets = [2, 2, 0], sizes = [16, 16, 4], strides = [1, 1, 1]} : vector<18x18x4xbf16> to vector<16x16x4xbf16>
    %52 = vector.shape_cast %51 : vector<16x16x4xbf16> to vector<256x4xbf16>
    %c8 = arith.constant 8 : index
    %c0_28 = arith.constant 0 : index
    %c0_29 = arith.constant 0 : index
    %53 = vector.load %arg2[%c8, %c0_28, %c0_29] : memref<9x4x128xbf16, #tpu.memory_space<vmem>>, vector<1x4x128xbf16>
    %54 = vector.shape_cast %53 : vector<1x4x128xbf16> to vector<4x128xbf16>
    %cst_30 = arith.constant dense<0.000000e+00> : vector<256x128xf32>
    %55 = tpu.matmul %52, %54, %cst_30 {dimension_numbers = #tpu.dot_dimension_numbers<[1], [0], [0], [1], [0, 0, 1, 1], [], []>} : vector<256x4xbf16>, vector<4x128xbf16>, vector<256x128xf32> -> vector<256x128xf32>
    %56 = arith.addf %50, %55 : vector<256x128xf32>
    %57 = vector.shape_cast %56 : vector<256x128xf32> to vector<16x16x128xf32>
    %c0_31 = arith.constant 0 : index
    %c0_32 = arith.constant 0 : index
    %c0_33 = arith.constant 0 : index
    %c0_34 = arith.constant 0 : index
    %58 = vector.load %arg3[%c0_31, %c0_32, %c0_33, %c0_34] : memref<1x16x16x128xf32, #tpu.memory_space<vmem>>, vector<1x16x16x128xf32>
    %59 = vector.shape_cast %58 : vector<1x16x16x128xf32> to vector<16x16x128xf32>
    %60 = vector.shape_cast %57 : vector<16x16x128xf32> to vector<1x16x16x128xf32>
    tpu.vector_store %arg3[%c0_31, %c0_32, %c0_33, %c0_34], %60 {strides = array<i32>} : memref<1x16x16x128xf32, #tpu.memory_space<vmem>>, vector<1x16x16x128xf32>,
    %cst_35 = arith.constant dense<0.000000e+00> : vector<128xf32>
    %61 = vector.multi_reduction <add>, %56, %cst_35 [0] : vector<256x128xf32> to vector<128xf32>
    %62 = vector.shape_cast %61 : vector<128xf32> to vector<1x128xf32>
    %63 = arith.mulf %56, %56 : vector<256x128xf32>
    %cst_36 = arith.constant dense<0.000000e+00> : vector<128xf32>
    %64 = vector.multi_reduction <add>, %63, %cst_36 [0] : vector<256x128xf32> to vector<128xf32>
    %65 = vector.shape_cast %64 : vector<128xf32> to vector<1x128xf32>
    %66 = tpu.concatenate %62, %65 in 0 : vector<1x128xf32>, vector<1x128xf32> -> vector<2x128xf32>
    %c0_37 = arith.constant 0 : index
    %c0_38 = arith.constant 0 : index
    %c0_39 = arith.constant 0 : index
    %67 = vector.load %arg4[%c0_37, %c0_38, %c0_39] : memref<1x2x128xf32, #tpu.memory_space<vmem>>, vector<1x2x128xf32>
    %68 = vector.shape_cast %67 : vector<1x2x128xf32> to vector<2x128xf32>
    %69 = vector.shape_cast %66 : vector<2x128xf32> to vector<1x2x128xf32>
    tpu.vector_store %arg4[%c0_37, %c0_38, %c0_39], %69 {strides = array<i32>} : memref<1x2x128xf32, #tpu.memory_space<vmem>>, vector<1x2x128xf32>,
    return
  }
  func.func @transform_0(%arg0: i32) -> (i32, i32, i32, i32) {
    %c0_i32 = arith.constant 0 : i32
    %c0_i32_0 = arith.constant 0 : i32
    %c0_i32_1 = arith.constant 0 : i32
    %c0_i32_2 = arith.constant 0 : i32
    return %arg0, %c0_i32, %c0_i32_0, %c0_i32_1 : i32, i32, i32, i32
  }
  func.func @transform_1(%arg0: i32) -> (i32, i32, i32) {
    %c0_i32 = arith.constant 0 : i32
    %c0_i32_0 = arith.constant 0 : i32
    %c0_i32_1 = arith.constant 0 : i32
    %c0_i32_2 = arith.constant 0 : i32
    return %c0_i32, %c0_i32_0, %c0_i32_1 : i32, i32, i32
  }
  func.func @transform_2(%arg0: i32) -> (i32, i32, i32, i32) {
    %c0_i32 = arith.constant 0 : i32
    %c0_i32_0 = arith.constant 0 : i32
    %c0_i32_1 = arith.constant 0 : i32
    %c0_i32_2 = arith.constant 0 : i32
    return %arg0, %c0_i32, %c0_i32_0, %c0_i32_1 : i32, i32, i32, i32
  }
  func.func @transform_3(%arg0: i32) -> (i32, i32, i32) {
    %c0_i32 = arith.constant 0 : i32
    %c0_i32_0 = arith.constant 0 : i32
    %c0_i32_1 = arith.constant 0 : i32
    return %arg0, %c0_i32, %c0_i32_0 : i32, i32, i32
  }
}

module attributes {stable_mosaic.version = 11 : i64} {
  func.func @kernel(%arg0: i32, %arg1: memref<1x16x8x256xf32, #tpu.memory_space<vmem>>, %arg2: memref<1x256xf32, #tpu.memory_space<vmem>>, %arg3: memref<1x256xf32, #tpu.memory_space<vmem>>, %arg4: memref<1x16x8x256xf32, #tpu.memory_space<vmem>>, %arg5: memref<1x8x8x128xf32, #tpu.memory_space<vmem>>) attributes {dimension_semantics = [#tpu.dimension_semantics<parallel>], iteration_bounds = array<i64: 2>, scalar_prefetch = 0 : i64, scratch_operands = 0 : i64, tpu.core_type = #tpu.core_type<tc>, window_params = [{transform_indices = @transform_0, window_bounds = array<i64: 1, 16, 8, 256>}, {pipeline_mode = #tpu.pipeline_mode<synchronous>, transform_indices = @transform_1, window_bounds = array<i64: 1, 256>}, {pipeline_mode = #tpu.pipeline_mode<synchronous>, transform_indices = @transform_2, window_bounds = array<i64: 1, 256>}, {transform_indices = @transform_3, window_bounds = array<i64: 1, 16, 8, 256>}, {transform_indices = @transform_4, window_bounds = array<i64: 1, 8, 8, 128>}]} {
    %c0 = arith.constant 0 : index
    %c0_0 = arith.constant 0 : index
    %c0_1 = arith.constant 0 : index
    %c0_2 = arith.constant 0 : index
    %0 = vector.load %arg1[%c0, %c0_0, %c0_1, %c0_2] : memref<1x16x8x256xf32, #tpu.memory_space<vmem>>, vector<1x16x8x256xf32>
    %1 = vector.shape_cast %0 : vector<1x16x8x256xf32> to vector<16x8x256xf32>
    %c0_3 = arith.constant 0 : index
    %c0_4 = arith.constant 0 : index
    %2 = vector.load %arg2[%c0_3, %c0_4] : memref<1x256xf32, #tpu.memory_space<vmem>>, vector<1x256xf32>
    %3 = vector.shape_cast %2 : vector<1x256xf32> to vector<1x1x256xf32>
    %4 = vector.broadcast %3 : vector<1x1x256xf32> to vector<16x8x256xf32>
    %5 = arith.mulf %1, %4 : vector<16x8x256xf32>
    %c0_5 = arith.constant 0 : index
    %c0_6 = arith.constant 0 : index
    %6 = vector.load %arg3[%c0_5, %c0_6] : memref<1x256xf32, #tpu.memory_space<vmem>>, vector<1x256xf32>
    %7 = vector.shape_cast %6 : vector<1x256xf32> to vector<1x1x256xf32>
    %8 = vector.broadcast %7 : vector<1x1x256xf32> to vector<16x8x256xf32>
    %9 = arith.addf %5, %8 : vector<16x8x256xf32>
    %cst = arith.constant 0.000000e+00 : f32
    %10 = vector.broadcast %cst : f32 to vector<16x8x256xf32>
    %11 = arith.maximumf %9, %10 : vector<16x8x256xf32>
    %c0_7 = arith.constant 0 : index
    %c0_8 = arith.constant 0 : index
    %c0_9 = arith.constant 0 : index
    %c0_10 = arith.constant 0 : index
    %12 = vector.load %arg4[%c0_7, %c0_8, %c0_9, %c0_10] : memref<1x16x8x256xf32, #tpu.memory_space<vmem>>, vector<1x16x8x256xf32>
    %13 = vector.shape_cast %12 : vector<1x16x8x256xf32> to vector<16x8x256xf32>
    %14 = vector.shape_cast %11 : vector<16x8x256xf32> to vector<1x16x8x256xf32>
    tpu.vector_store %arg4[%c0_7, %c0_8, %c0_9, %c0_10], %14 {strides = array<i32>} : memref<1x16x8x256xf32, #tpu.memory_space<vmem>>, vector<1x16x8x256xf32>,
    %15 = vector.extract_strided_slice %11 {offsets = [0, 0, 0], sizes = [16, 8, 128], strides = [1, 1, 1]} : vector<16x8x256xf32> to vector<16x8x128xf32>
    %16 = vector.extract_strided_slice %11 {offsets = [0, 0, 128], sizes = [16, 8, 128], strides = [1, 1, 1]} : vector<16x8x256xf32> to vector<16x8x128xf32>
    %17 = arith.maximumf %15, %16 : vector<16x8x128xf32>
    %18 = vector.shape_cast %17 : vector<16x8x128xf32> to vector<8x2x8x128xf32>
    %cst_11 = arith.constant dense<0xFF800000> : vector<8x8x128xf32>
    %19 = vector.multi_reduction <maximumf>, %18, %cst_11 [1] : vector<8x2x8x128xf32> to vector<8x8x128xf32>
    %c0_12 = arith.constant 0 : index
    %c0_13 = arith.constant 0 : index
    %c0_14 = arith.constant 0 : index
    %c0_15 = arith.constant 0 : index
    %20 = vector.load %arg5[%c0_12, %c0_13, %c0_14, %c0_15] : memref<1x8x8x128xf32, #tpu.memory_space<vmem>>, vector<1x8x8x128xf32>
    %21 = vector.shape_cast %20 : vector<1x8x8x128xf32> to vector<8x8x128xf32>
    %22 = vector.shape_cast %19 : vector<8x8x128xf32> to vector<1x8x8x128xf32>
    tpu.vector_store %arg5[%c0_12, %c0_13, %c0_14, %c0_15], %22 {strides = array<i32>} : memref<1x8x8x128xf32, #tpu.memory_space<vmem>>, vector<1x8x8x128xf32>,
    return
  }
  func.func @transform_0(%arg0: i32) -> (i32, i32, i32, i32) {
    %c0_i32 = arith.constant 0 : i32
    %c0_i32_0 = arith.constant 0 : i32
    %c0_i32_1 = arith.constant 0 : i32
    %c0_i32_2 = arith.constant 0 : i32
    return %arg0, %c0_i32, %c0_i32_0, %c0_i32_1 : i32, i32, i32, i32
  }
  func.func @transform_1(%arg0: i32) -> (i32, i32) {
    %c0_i32 = arith.constant 0 : i32
    %c0_i32_0 = arith.constant 0 : i32
    %c0_i32_1 = arith.constant 0 : i32
    return %c0_i32, %c0_i32_0 : i32, i32
  }
  func.func @transform_2(%arg0: i32) -> (i32, i32) {
    %c0_i32 = arith.constant 0 : i32
    %c0_i32_0 = arith.constant 0 : i32
    %c0_i32_1 = arith.constant 0 : i32
    return %c0_i32, %c0_i32_0 : i32, i32
  }
  func.func @transform_3(%arg0: i32) -> (i32, i32, i32, i32) {
    %c0_i32 = arith.constant 0 : i32
    %c0_i32_0 = arith.constant 0 : i32
    %c0_i32_1 = arith.constant 0 : i32
    %c0_i32_2 = arith.constant 0 : i32
    return %arg0, %c0_i32, %c0_i32_0, %c0_i32_1 : i32, i32, i32, i32
  }
  func.func @transform_4(%arg0: i32) -> (i32, i32, i32, i32) {
    %c0_i32 = arith.constant 0 : i32
    %c0_i32_0 = arith.constant 0 : i32
    %c0_i32_1 = arith.constant 0 : i32
    %c0_i32_2 = arith.constant 0 : i32
    return %arg0, %c0_i32, %c0_i32_0, %c0_i32_1 : i32, i32, i32, i32
  }
}

</mosaic_0001>

<bundles_post_ra>
// kernel: tile.18
= control target key start
LH: loop header
LB: loop body
LE: loop exit
PB: predicated region body
PF: predicated region fallthrough
CT: control target
= control target key end

     0   :  { %2 = vsyncpa [#allocation1], 0  ;;  %s68_s0 = inlined_call_operand.vmem [shape: f32[128], index: 0, kind: input, shape index: {}]   ;;  %s69_s1 = inlined_call_operand.hbm [shape: f32[2,128], index: 1, kind: output, shape index: {}]  }
   0x1   :  { %v5_v0 = vld [vmem:[%s68_s0] ss:$0 sm:$0xff]  ;;  %s42_s0 = smov [#allocation0]  }
   0x2   :  { %6 = vst [vmem:[#allocation0] sm:$0x3] %v5_v0  ;;  %s11_s8 = sshll.u32 %s42_s0, 4  ;;  %s12_s8 = int_to_ptr.vmem [resolvable:$true] %s11_s8 }
   0x3   :  { %s18_s9 = scalar_lea.vmem %s12_s8, 32  ;;  %p23_p1 = scmp.lt.s32.totalorder %s12_s8, %s12_s8 }
   0x4   :  { %p19_p0 = scmp.ne.s32.totalorder %s12_s8, %s18_s9  ;;  %p24_p2 = scmp.lt.s32.totalorder %s18_s9, %s18_s9 }
   0x6   :  { %p25_p3 = por %p24_p2, %p23_p1 }
   0x8   :  { %p26_p4 = pnand %p25_p3, %p19_p0 }
   0xa   :  { %29 = shalt.err (!%p26_p4)
}
   0xb   :  { %s30_s12 = scalar_lea.hbm %s69_s1, 32 }
   0xc   :  { %p31_p5 = scmp.ne.s32.totalorder %s69_s1, %s30_s12  ;;  %p34_p6 = scmp.lt.u32.totalorder %s30_s12, %s69_s1 }
   0xe   :  { %p36_p7 = pnand %p34_p6, %p31_p5 }
  0x10   :  { %39 = shalt.err (!%p36_p7)
}
  0x11   :  { %14 = dma.vmem_to_hbm [thread:$0]  %s12_s8, 32, %s69_s1, [#allocation1]  }
  0x12   :  { %40 = dma.done.wait [#allocation1], 32  }
  0x13   :  { %41 = vsyncadd [#allocation1], 4294967264 }
  0x14   :  { %16 = vsyncpa [#allocation1], 1 }

// kernel: down_forward.3
= control target key start
LH: loop header
LB: loop body
LE: loop exit
PB: predicated region body
PF: predicated region fallthrough
CT: control target
= control target key end

     0   :  { %10 = vsyncpa [#allocation3], 0  ;;  %s1604_s0 = inlined_call_operand.hbm [shape: f32[2,16,8,256], index: 0, kind: input, shape index: {}]   ;;  %s1605_s1 = inlined_call_operand.hbm [shape: f32[1,256], index: 1, kind: input, shape index: {}]   ;;  %s1606_s2 = inlined_call_operand.hbm [shape: f32[1,256], index: 2, kind: input, shape index: {}]   ;;  %s1607_s3 = inlined_call_operand.hbm [shape: f32[2,16,8,256], index: 3, kind: output, shape index: {0}]   ;;  %s1608_s4 = inlined_call_operand.hbm [shape: f32[2,8,8,128], index: 4, kind: output, shape index: {1}]  }
   0x1   :  { %12 = vsyncpa [#allocation3 + $0x1], 0 }
   0x2   :  { %13 = vsyncpa [#allocation6], 0 }
   0x3   :  { %14 = vsyncpa [#allocation4], 0 }
   0x4   :  { %16 = vsyncpa [#allocation4 + $0x1], 0 }
   0x5   :  { %17 = vsyncpa [#allocation10], 0 }
   0x6   :  { %19 = vsyncpa [#allocation10 + $0x1], 0  ;;  %s956_s15 = smov 0   ;;  %s958_s16 = smov 0  }
   0x7   :  { %s960_s17 = smov 0   ;;  %s962_s18 = smov 0  }
   0x8 LB: > { %s977_s19 = sadd.s32 4294967295, %s918_s18   ;;  %s627_s20 = sadd.s32 4294967294, %s918_s18   ;;  %s918_s18 = sphi %s962_s18, %s1641_s18   ;;  %s914_s17 = sphi %s960_s17, %s1640_s17   ;;  %s910_s16 = sphi %s958_s16, %s1639_s16   ;;  %s906_s15 = sphi %s956_s15, %s1638_s15  }
   0x9   : > { %s981_s21 = sadd.s32 1, %s918_s18   ;;  %s32_s22 = sadd.s32 1, %s914_s17 }
   0xa   : > { %s29_s23 = ssub.s32 %s918_s18, %s981_s21  ;;  %p39_p0 = scmp.ne.s32.totalorder %s914_s17, %s910_s16 }
   0xb   : > { %p30_p1 = scmp.eq.s32.totalorder %s29_s23, 0  ;;  %p40_p2 = scmp.eq.s32.totalorder %s918_s18, 0 }
   0xc   : > { %p45_p3 = scmp.ne.s32.totalorder %s910_s16, %s906_s15  ;;  %p1609_p4 = scmp.eq.s32.totalorder %s977_s19, 0 }
   0xd   : > { %s993_s24 = scalar_select %p30_p1, %s914_s17, %s32_s22  }
   0xe   : > { %p995_p5 = por %p40_p2, %p39_p0  ;;  %p1001_p6 = por %p1609_p4, %p45_p3 }
   0xf   : > { %p111_p7 = scmp.eq.s32.totalorder %s977_s19, 1  ;;  %p117_p8 = scmp.eq.s32.totalorder %s627_s20, 1 }
  0x10   : > { %s1619_s26 = scalar_select %p1001_p6, 1, 0 }
  0x11   : > { %p628_p9 = scmp.ge.s32.totalorder %s918_s18, 1  ;;  %p150_p10 = scmp.lt.s32.totalorder %s918_s18, 3 }
  0x12   : > { %p1008_p11 = por %p111_p7, %p39_p0  ;;  %p1012_p12 = por %p117_p8, %p45_p3 }
  0x13   : > { %p1016_p13 = pnand %p628_p9, %p150_p10  ;;  %s920_s30 = smov [#allocation5]  }
  0x14   : > { %s1620_s27 = scalar_select %p1008_p11, 1, 0 }
  0x15   : > { %s1621_s28 = scalar_select %p1012_p12, 1, 0 }
  0x16   : > { %s1622_s29 = scalar_select %p1016_p13, 1, 0 }
  0x17   : > { %p666_p2 = pneg %p1016_p13  ;;  %s163_s5 = sshll.u32 %s920_s30, 4  ;;  %s164_s5 = int_to_ptr.vmem [resolvable:$true] %s163_s5 }
  0x18   : > { %p686_p4 = scmp.lt.s32.totalorder %s918_s18, 2  ;;  %p1623_p0 = scmp.eq.s32.totalorder %s977_s19, 0 }
  0x19   : > { %s921_s8 = smov [#allocation7]   ;;  %s730_s12 = scalar_lea.hbm %s1605_s1, 32 }
  0x1a   : > { %p1026_p7 = pnand %p666_p2, %p1623_p0  ;;  %p1032_p3 = pnand %p686_p4, %p995_p5 }
  0x1b   : > { %s174_s9 = sshll.u32 %s921_s8, 4  ;;  %p731_p8 = scmp.ne.s32.totalorder %s1605_s1, %s730_s12  ;;  %s1036_s9 = int_to_ptr.vmem [resolvable:$true] %s174_s9 }
  0x1c   : > { %s1625_s7 = scalar_select %p1032_p3, 1, 0 }
  0x1d   : > { %p732_p9 = pneg %p1026_p7  ;;  %p737_p10 = scmp.lt.u32.totalorder %s730_s12, %s1605_s1 }
  0x1f   : > { %p733_p4 = pnand %p732_p9, %p731_p8 }
  0x21   : > { %p734_p5 = pneg %p733_p4 }
  0x23   : > { %p739_p2 = pnand %p737_p10, %p734_p5 }
  0x25   : > { %742 = shalt.err (!%p739_p2)
}
  0x26   : > { %s743_s23 = scalar_lea.vmem %s164_s5, 32  ;;  %p751_p11 = scmp.lt.s32.totalorder %s164_s5, %s164_s5 }
  0x27   : > { %p744_p0 = scmp.ne.s32.totalorder %s164_s5, %s743_s23  ;;  %p752_p6 = scmp.lt.s32.totalorder %s743_s23, %s743_s23 }
  0x29   : > { %p746_p1 = pnand %p744_p0, %p732_p9  ;;  %p753_p13 = por %p752_p6, %p751_p11 }
  0x2b   : > { %p747_p12 = pneg %p746_p1 }
  0x2d   : > { %p754_p3 = pnand %p753_p13, %p747_p12 }
  0x2f   : > { %757 = shalt.err (!%p754_p3)
}
  0x30   : > { %669 = dma.hbm_to_vmem [thread:$0]  (!%p1026_p7), %s1605_s1, 32, %s164_s5, [#allocation6]  }
  0x31   : > { %s185_s8 = sand.u32 1, %s914_s17   ;;  %s758_s12 = scalar_lea.hbm %s1606_s2, 32 }
  0x32   : > { %p759_p1 = scmp.ne.s32.totalorder %s1606_s2, %s758_s12  ;;  %p765_p12 = scmp.lt.u32.totalorder %s758_s12, %s1606_s2 }
  0x34   : > { %p761_p6 = pnand %p759_p1, %p732_p9 }
  0x36   : > { %p762_p11 = pneg %p761_p6 }
  0x38   : > { %p767_p13 = pnand %p765_p12, %p762_p11 }
  0x3a   : > { %770 = shalt.err (!%p767_p13)
}
  0x3b   : > { %s771_s5 = scalar_lea.vmem %s1036_s9, 32  ;;  %p779_p5 = scmp.lt.s32.totalorder %s1036_s9, %s1036_s9 }
  0x3c   : > { %p772_p3 = scmp.ne.s32.totalorder %s1036_s9, %s771_s5  ;;  %p780_p10 = scmp.lt.s32.totalorder %s771_s5, %s771_s5 }
  0x3e   : > { %p774_p8 = pnand %p772_p3, %p732_p9  ;;  %p781_p2 = por %p780_p10, %p779_p5 }
  0x40   : > { %p775_p4 = pneg %p774_p8 }
  0x42   : > { %p782_p0 = pnand %p781_p2, %p775_p4 }
  0x44   : > { %785 = shalt.err (!%p782_p0)
}
  0x45   : > { %672 = dma.hbm_to_vmem [thread:$0]  (!%p1026_p7), %s1606_s2, 32, %s1036_s9, [#allocation6]  }
  0x46   : > { %s632_s30 = sshll.u32 %s185_s8, 8  ;;  %s649_s10 = sshll.u32 %s918_s18, 12 }
  0x47   : > { %s1090_s13 = scalar_lea.hbm %s1604_s0, %s649_s10  ;;  %s189_s6 = scalar_lea.vmem [#allocation2], %s632_s30 }
  0x48   : > { %s196_s14 = sshll.u32 %s189_s6, 4  ;;  %s1094_s20 = scalar_lea.sflag [#allocation3], %s185_s8  ;;  %s1092_s14 = int_to_ptr.vmem [resolvable:$true] %s196_s14 }
  0x49   : > { %s786_s22 = scalar_lea.hbm %s1090_s13, 4096  ;;  %p1626_p7 = scmp.ne.s32.totalorder %s1625_s7, 0 }
  0x4a   : > { %p787_p9 = scmp.ne.s32.totalorder %s1090_s13, %s786_s22  ;;  %s791_s23 = scalar_lea.hbm %s1604_s0, 8192 }
  0x4b   : > { %p788_p1 = pneg %p1626_p7  ;;  %p792_p12 = scmp.lt.u32.totalorder %s1090_s13, %s1604_s0 }
  0x4c   : > { %p793_p13 = scmp.lt.u32.totalorder %s791_s23, %s786_s22  ;;  %p795_p8 = scmp.lt.u32.totalorder %s786_s22, %s1090_s13 }
  0x4d   : > { %p789_p6 = pnand %p788_p1, %p787_p9 }
  0x4e   : > { %p794_p3 = por %p793_p13, %p792_p12 }
  0x4f   : > { %p790_p11 = pneg %p789_p6 }
  0x50   : > { %p796_p4 = por %p795_p8, %p794_p3 }
  0x52   : > { %p797_p5 = pnand %p796_p4, %p790_p11 }
  0x54   : > { %800 = shalt.err (!%p797_p5)
}
  0x55   : > { %s801_s8 = scalar_lea.vmem %s1092_s14, 4096  ;;  %s922_s30 = smov [#allocation2]  }
  0x56   : > { %p802_p10 = scmp.ne.s32.totalorder %s1092_s14, %s801_s8  ;;  %s806_s11 = sshll.u32 %s922_s30, 4  ;;  %s807_s11 = int_to_ptr.vmem [resolvable:$false] %s806_s11 }
  0x57   : > { %s808_s12 = scalar_lea.vmem %s807_s11, 8192  ;;  %p809_p9 = scmp.lt.s32.totalorder %s1092_s14, %s807_s11 }
  0x58   : > { %p804_p2 = pnand %p802_p10, %p788_p1  ;;  %p810_p6 = scmp.lt.s32.totalorder %s808_s12, %s801_s8 }
  0x5a   : > { %p805_p0 = pneg %p804_p2  ;;  %p811_p12 = por %p810_p6, %p809_p9 }
  0x5c   : > { %p812_p13 = pnand %p811_p12, %p805_p0 }
  0x5e   : > { %815 = shalt.err (!%p812_p13)
}
  0x5f   : > { %s923_s6 = smov 256   ;;  %s924_s22 = smov 16  }
  0x60   : > { %676 = dma.hbm_to_vmem [thread:$0]  (!%p1626_p7), %s1090_s13, 4096, %s1092_s14, %s1094_s20, %s923_s6, %s923_s6, %s924_s22  }
  0x61   : > { %p1627_p1 = scmp.ne.s32.totalorder %s1622_s29, 0 }
  0x62   : > { %s1125_s9 = sand.u32 (!%p1627_p1), 1, %s910_s16   ;;  %p1628_p11 = scmp.ne.s32.totalorder (!%p1627_p1), %s1619_s26, 0 }
  0x63   : > { %208 = sbr.rel (%p1627_p1) target bundleno = 188 (0xbc), region = 32  ;;  %s636_s5 = sshll.u32 (!%p1627_p1), %s1125_s9, 8 }
  0x64   : > { %s211_s23 = scalar_lea.sflag (!%p1627_p1), [#allocation3], %s1125_s9  ;;  %s1131_s25 = scalar_lea.vmem (!%p1627_p1), [#allocation2], %s636_s5 }
  0x6a   : > { %889 = dma.done.wait (%p1628_p11), %s211_s23, 4096  }
  0x6b   : > { %891 = vsyncadd (%p1628_p11), %s211_s23, 4294963200  ;;  %p1629_p7 = scmp.eq.s32.totalorder %s977_s19, 0 }
  0x6d   : > { %893 = dma.done.wait (%p1629_p7), [#allocation6], 64   ;;  %p1630_p3 = pmov %p1629_p7 }
  0x6e   : > { %v286_v0 = vlaneseq  ;;  %v252_v4 = vld [vmem:[%s1131_s25] sm:$0xff]  ;;  %v253_v9 = vld [vmem:[%s1131_s25 + $0x8] sm:$0xff]  ;;  %v254_v12 = vld [vmem:[%s1131_s25 + $0x10] sm:$0xff]  ;;  %s1207_s26 = scalar_lea.vmem [#allocation8], %s636_s5  ;;  %s640_s29 = sshll.u32 %s1125_s9, 6 }
  0x6f   : > { %895 = vsyncadd (%p1630_p3), [#allocation6], 4294967232  ;;  %v284_v5 = vld [vmem:[#allocation5] sm:$0x3]  ;;  %v328_v6 = vld [vmem:[#allocation7] sm:$0x3] }
  0x70   : > { %v287_v1 = vshrl.u32 %v286_v0, 7  ;;  %v255_v13 = vld [vmem:[%s1131_s25 + $0x18] sm:$0xff]  ;;  %v256_v14 = vld [vmem:[%s1131_s25 + $0x20] sm:$0xff]  ;;  %v257_v15 = vld [vmem:[%s1131_s25 + $0x28] sm:$0xff]  ;;  %s650_s7 = sshll.u32 %s977_s19, 12  ;;  %s487_s13 = sshll.u32 %s1207_s26, 4  ;;  %s1425_s13 = int_to_ptr.vmem [resolvable:$true] %s487_s13 }
  0x71   : > { %v258_v16 = vld [vmem:[%s1131_s25 + $0x30] sm:$0xff]  ;;  %v259_v21 = vld [vmem:[%s1131_s25 + $0x38] sm:$0xff]  ;;  %v260_v30 = vld [vmem:[%s1131_s25 + $0x40] sm:$0xff]  ;;  %s1419_s10 = scalar_lea.hbm %s1607_s3, %s650_s7  ;;  %s1469_s8 = scalar_lea.vmem [#allocation9], %s640_s29 }
  0x72   : > { %v288_v2 = vsub.s32 0, %v287_v1  ;;  %v292_v3 = vsub.s32 1, %v287_v1  ;;  %v261_v31 = vld [vmem:[%s1131_s25 + $0x48] sm:$0xff]  ;;  %v262_v32 = vld [vmem:[%s1131_s25 + $0x50] sm:$0xff]  ;;  %v263_v37 = vld [vmem:[%s1131_s25 + $0x58] sm:$0xff]  ;;  %s503_s30 = sshll.u32 %s1469_s8, 4  ;;  %s1545_s30 = int_to_ptr.vmem [resolvable:$true] %s503_s30 }
  0x73   : > { %v264_v38 = vld [vmem:[%s1131_s25 + $0x60] sm:$0xff]  ;;  %v265_v39 = vld [vmem:[%s1131_s25 + $0x68] sm:$0xff]  ;;  %v266_v44 = vld [vmem:[%s1131_s25 + $0x70] sm:$0xff]  ;;  %s469_s11 = scalar_lea.sflag [#allocation4], %s1125_s9  ;;  %s816_s12 = scalar_lea.vmem %s1425_s13, 4096 }
  0x74   : > { %v1142_v7 = vrot.slane %v284_v5, %v288_v2  ;;  %v1144_v8 = vrot.slane %v328_v6, %v288_v2  ;;  %v1147_v10 = vrot.slane %v284_v5, %v292_v3  ;;  %v1149_v11 = vrot.slane %v328_v6, %v292_v3  ;;  %v267_v45 = vld [vmem:[%s1131_s25 + $0x78] sm:$0xff]  ;;  %v268_v62 = vld [vmem:[%s1131_s25 + $0x80] sm:$0xff]  ;;  %v269_v63 = vld [vmem:[%s1131_s25 + $0x88] sm:$0xff]  ;;  %p817_p8 = scmp.ne.s32.totalorder %s1425_s13, %s816_s12  ;;  %p1631_p4 = scmp.ne.s32.totalorder %s1620_s27, 0 }
  0x75   : > { %v270_v0 = vld [vmem:[%s1131_s25 + $0x90] sm:$0xff]  ;;  %v271_v5 = vld [vmem:[%s1131_s25 + $0x98] sm:$0xff]  ;;  %v272_v6 = vld [vmem:[%s1131_s25 + $0xa0] sm:$0xff]  ;;  %s925_s6 = smov [#allocation8]  }
  0x76   : > { %v296_v17 = vmul.f32 %v1142_v7, %v252_v4  ;;  %v297_v18 = vmul.f32 %v1147_v10, %v253_v9  ;;  %v298_v19 = vmul.f32 %v1142_v7, %v254_v12  ;;  %v299_v20 = vmul.f32 %v1147_v10, %v255_v13  ;;  %v273_v9 = vld [vmem:[%s1131_s25 + $0xa8] sm:$0xff]  ;;  %p818_p5 = pnand %p817_p8, %p1631_p4  ;;  %s820_s22 = sshll.u32 %s925_s6, 4  ;;  %s821_s22 = int_to_ptr.vmem [resolvable:$false] %s820_s22 }
  0x77   : > { %v300_v22 = vmul.f32 %v1142_v7, %v256_v14  ;;  %v301_v23 = vmul.f32 %v1147_v10, %v257_v15  ;;  %v302_v24 = vmul.f32 %v1142_v7, %v258_v16  ;;  %v303_v25 = vmul.f32 %v1147_v10, %v259_v21  ;;  %v274_v16 = vld [vmem:[%s1131_s25 + $0xb0] sm:$0xff]  ;;  %s822_s5 = scalar_lea.vmem %s821_s22, 8192  ;;  %p823_p2 = scmp.lt.s32.totalorder %s1425_s13, %s821_s22 }
  0x78   : > { %v1166_v26 = vadd.f32 %v1144_v8, %v296_v17  ;;  %v1169_v27 = vadd.f32 %v1149_v11, %v297_v18  ;;  %v1172_v28 = vadd.f32 %v1144_v8, %v298_v19  ;;  %v1175_v29 = vadd.f32 %v1149_v11, %v299_v20  ;;  %v275_v17 = vld [vmem:[%s1131_s25 + $0xb8] sm:$0xff]  ;;  %p819_p10 = pneg %p818_p5  ;;  %p824_p0 = scmp.lt.s32.totalorder %s822_s5, %s816_s12 }
  0x79   : > { %v1181_v33 = vadd.f32 %v1144_v8, %v300_v22  ;;  %v1184_v34 = vadd.f32 %v1149_v11, %v301_v23  ;;  %v1187_v35 = vadd.f32 %v1144_v8, %v302_v24  ;;  %v1190_v36 = vadd.f32 %v1149_v11, %v303_v25 }
  0x7a   : > { %v372_v40 = vmax.f32 %v1166_v26, 0.0  ;;  %v373_v41 = vmax.f32 %v1169_v27, 0.0  ;;  %v374_v42 = vmax.f32 %v1172_v28, 0.0  ;;  %v375_v43 = vmax.f32 %v1175_v29, 0.0  ;;  %p825_p9 = por %p824_p0, %p823_p2 }
  0x7b   : > { %v376_v46 = vmax.f32 %v1181_v33, 0.0  ;;  %v377_v47 = vmax.f32 %v1184_v34, 0.0  ;;  %v378_v48 = vmax.f32 %v1187_v35, 0.0  ;;  %v379_v49 = vmax.f32 %v1190_v36, 0.0 }
  0x7c   : > { %404 = vst [vmem:[%s1207_s26] sm:$0xff] %v372_v40  ;;  %405 = vst [vmem:[%s1207_s26 + $0x8] sm:$0xff] %v373_v41  ;;  %v304_v50 = vmul.f32 %v1142_v7, %v260_v30  ;;  %v305_v51 = vmul.f32 %v1147_v10, %v261_v31  ;;  %v306_v52 = vmul.f32 %v1142_v7, %v262_v32  ;;  %p826_p6 = pnand %p825_p9, %p819_p10 }
  0x7d   : > { %406 = vst [vmem:[%s1207_s26 + $0x10] sm:$0xff] %v374_v42  ;;  %407 = vst [vmem:[%s1207_s26 + $0x18] sm:$0xff] %v375_v43  ;;  %v307_v53 = vmul.f32 %v1147_v10, %v263_v37  ;;  %v308_v54 = vmul.f32 %v1142_v7, %v264_v38  ;;  %v309_v55 = vmul.f32 %v1147_v10, %v265_v39 }
  0x7e   : > { %408 = vst [vmem:[%s1207_s26 + $0x20] sm:$0xff] %v376_v46  ;;  %409 = vst [vmem:[%s1207_s26 + $0x28] sm:$0xff] %v377_v47  ;;  %v310_v56 = vmul.f32 %v1142_v7, %v266_v44  ;;  %v311_v57 = vmul.f32 %v1147_v10, %v267_v45  ;;  %v1242_v58 = vadd.f32 %v1144_v8, %v304_v50  ;;  %v276_v50 = vld [vmem:[%s1131_s25 + $0xc0] sm:$0xff] }
  0x7f   : > { %410 = vst [vmem:[%s1207_s26 + $0x30] sm:$0xff] %v378_v48  ;;  %411 = vst [vmem:[%s1207_s26 + $0x38] sm:$0xff] %v379_v49  ;;  %v1245_v59 = vadd.f32 %v1149_v11, %v305_v51  ;;  %v1248_v60 = vadd.f32 %v1144_v8, %v306_v52  ;;  %v1251_v61 = vadd.f32 %v1149_v11, %v307_v53  ;;  %v277_v51 = vld [vmem:[%s1131_s25 + $0xc8] sm:$0xff]  ;;  %v278_v52 = vld [vmem:[%s1131_s25 + $0xd0] sm:$0xff] }
  0x80   : > { %v1257_v1 = vadd.f32 %v1144_v8, %v308_v54  ;;  %v1260_v2 = vadd.f32 %v1149_v11, %v309_v55  ;;  %v1263_v3 = vadd.f32 %v1144_v8, %v310_v56  ;;  %v1266_v4 = vadd.f32 %v1149_v11, %v311_v57  ;;  %v279_v57 = vld [vmem:[%s1131_s25 + $0xd8] sm:$0xff] }
  0x81   : > { %v380_v12 = vmax.f32 %v1242_v58, 0.0  ;;  %v381_v13 = vmax.f32 %v1245_v59, 0.0  ;;  %v382_v14 = vmax.f32 %v1248_v60, 0.0  ;;  %v383_v15 = vmax.f32 %v1251_v61, 0.0 }
  0x82   : > { %v384_v18 = vmax.f32 %v1257_v1, 0.0  ;;  %v385_v19 = vmax.f32 %v1260_v2, 0.0  ;;  %v386_v20 = vmax.f32 %v1263_v3, 0.0  ;;  %v387_v21 = vmax.f32 %v1266_v4, 0.0 }
  0x83   : > { %412 = vst [vmem:[%s1207_s26 + $0x40] sm:$0xff] %v380_v12  ;;  %413 = vst [vmem:[%s1207_s26 + $0x48] sm:$0xff] %v381_v13  ;;  %v312_v22 = vmul.f32 %v1142_v7, %v268_v62  ;;  %v313_v23 = vmul.f32 %v1147_v10, %v269_v63  ;;  %v314_v24 = vmul.f32 %v1142_v7, %v270_v0  ;;  %v280_v62 = vld [vmem:[%s1131_s25 + $0xe0] sm:$0xff]  ;;  %v281_v63 = vld [vmem:[%s1131_s25 + $0xe8] sm:$0xff] }
  0x84   : > { %414 = vst [vmem:[%s1207_s26 + $0x50] sm:$0xff] %v382_v14  ;;  %415 = vst [vmem:[%s1207_s26 + $0x58] sm:$0xff] %v383_v15  ;;  %v315_v25 = vmul.f32 %v1147_v10, %v271_v5  ;;  %v316_v30 = vmul.f32 %v1142_v7, %v272_v6  ;;  %v317_v31 = vmul.f32 %v1147_v10, %v273_v9 }
  0x85   : > { %416 = vst [vmem:[%s1207_s26 + $0x60] sm:$0xff] %v384_v18  ;;  %417 = vst [vmem:[%s1207_s26 + $0x68] sm:$0xff] %v385_v19  ;;  %v318_v32 = vmul.f32 %v1142_v7, %v274_v16  ;;  %v319_v37 = vmul.f32 %v1147_v10, %v275_v17  ;;  %v1314_v38 = vadd.f32 %v1144_v8, %v312_v22  ;;  %v282_v16 = vld [vmem:[%s1131_s25 + $0xf0] sm:$0xff]  ;;  %v283_v17 = vld [vmem:[%s1131_s25 + $0xf8] sm:$0xff] }
  0x86   : > { %418 = vst [vmem:[%s1207_s26 + $0x70] sm:$0xff] %v386_v20  ;;  %419 = vst [vmem:[%s1207_s26 + $0x78] sm:$0xff] %v387_v21  ;;  %v1317_v39 = vadd.f32 %v1149_v11, %v313_v23  ;;  %v1320_v44 = vadd.f32 %v1144_v8, %v314_v24  ;;  %v1323_v45 = vadd.f32 %v1149_v11, %v315_v25 }
  0x87   : > { %v1329_v53 = vadd.f32 %v1144_v8, %v316_v30  ;;  %v1332_v54 = vadd.f32 %v1149_v11, %v317_v31  ;;  %v1335_v55 = vadd.f32 %v1144_v8, %v318_v32  ;;  %v1338_v56 = vadd.f32 %v1149_v11, %v319_v37 }
  0x88   : > { %v388_v0 = vmax.f32 %v1314_v38, 0.0  ;;  %v389_v5 = vmax.f32 %v1317_v39, 0.0  ;;  %v390_v6 = vmax.f32 %v1320_v44, 0.0  ;;  %v391_v9 = vmax.f32 %v1323_v45, 0.0 }
  0x89   : > { %v1614_v22 = vmax.f32 %v1329_v53, 0.0  ;;  %v1615_v23 = vmax.f32 %v1332_v54, 0.0  ;;  %v1616_v24 = vmax.f32 %v1335_v55, 0.0  ;;  %v1617_v25 = vmax.f32 %v1338_v56, 0.0 }
  0x8a   : > { %420 = vst [vmem:[%s1207_s26 + $0x80] sm:$0xff] %v388_v0  ;;  %421 = vst [vmem:[%s1207_s26 + $0x88] sm:$0xff] %v389_v5  ;;  %v320_v30 = vmul.f32 %v1142_v7, %v276_v50  ;;  %v321_v31 = vmul.f32 %v1147_v10, %v277_v51  ;;  %v322_v32 = vmul.f32 %v1142_v7, %v278_v52 }
  0x8b   : > { %422 = vst [vmem:[%s1207_s26 + $0x90] sm:$0xff] %v390_v6  ;;  %423 = vst [vmem:[%s1207_s26 + $0x98] sm:$0xff] %v391_v9  ;;  %v323_v37 = vmul.f32 %v1147_v10, %v279_v57  ;;  %v324_v50 = vmul.f32 %v1142_v7, %v280_v62  ;;  %v325_v51 = vmul.f32 %v1147_v10, %v281_v63 }
  0x8c   : > { %424 = vst [vmem:[%s1207_s26 + $0xa0] sm:$0xff] %v1614_v22  ;;  %425 = vst [vmem:[%s1207_s26 + $0xa8] sm:$0xff] %v1615_v23  ;;  %v326_v52 = vmul.f32 %v1142_v7, %v282_v16  ;;  %v327_v57 = vmul.f32 %v1147_v10, %v283_v17  ;;  %v1388_v22 = vadd.f32 %v1144_v8, %v320_v30 }
  0x8d   : > { %426 = vst [vmem:[%s1207_s26 + $0xb0] sm:$0xff] %v1616_v24  ;;  %427 = vst [vmem:[%s1207_s26 + $0xb8] sm:$0xff] %v1617_v25  ;;  %v1391_v23 = vadd.f32 %v1149_v11, %v321_v31  ;;  %v1394_v24 = vadd.f32 %v1144_v8, %v322_v32  ;;  %v1397_v25 = vadd.f32 %v1149_v11, %v323_v37 }
  0x8e   : > { %v1401_v7 = vadd.f32 %v1144_v8, %v324_v50  ;;  %v1404_v10 = vadd.f32 %v1149_v11, %v325_v51  ;;  %v1407_v62 = vadd.f32 %v1144_v8, %v326_v52  ;;  %v1410_v63 = vadd.f32 %v1149_v11, %v327_v57 }
  0x8f   : > { %v396_v16 = vmax.f32 %v1388_v22, 0.0  ;;  %v397_v17 = vmax.f32 %v1391_v23, 0.0  ;;  %v398_v30 = vmax.f32 %v1394_v24, 0.0  ;;  %v399_v31 = vmax.f32 %v1397_v25, 0.0 }
  0x90   : > { %v400_v8 = vmax.f32 %v1401_v7, 0.0  ;;  %v401_v11 = vmax.f32 %v1404_v10, 0.0  ;;  %v402_v32 = vmax.f32 %v1407_v62, 0.0  ;;  %v403_v37 = vmax.f32 %v1410_v63, 0.0 }
  0x91   : > { %428 = vst [vmem:[%s1207_s26 + $0xc0] sm:$0xff] %v396_v16  ;;  %429 = vst [vmem:[%s1207_s26 + $0xc8] sm:$0xff] %v397_v17  ;;  %v436_v50 = vmax.f32 %v372_v40, %v373_v41  ;;  %v437_v51 = vmax.f32 %v374_v42, %v375_v43  ;;  %v438_v52 = vmax.f32 %v376_v46, %v377_v47 }
  0x92   : > { %430 = vst [vmem:[%s1207_s26 + $0xd0] sm:$0xff] %v398_v30  ;;  %431 = vst [vmem:[%s1207_s26 + $0xd8] sm:$0xff] %v399_v31  ;;  %v439_v57 = vmax.f32 %v378_v48, %v379_v49  ;;  %v440_v26 = vmax.f32 %v380_v12, %v381_v13  ;;  %v441_v27 = vmax.f32 %v382_v14, %v383_v15 }
  0x93   : > { %432 = vst [vmem:[%s1207_s26 + $0xe0] sm:$0xff] %v400_v8  ;;  %433 = vst [vmem:[%s1207_s26 + $0xe8] sm:$0xff] %v401_v11  ;;  %v442_v28 = vmax.f32 %v384_v18, %v385_v19  ;;  %v443_v29 = vmax.f32 %v386_v20, %v387_v21  ;;  %v452_v33 = vmax.f32 %v436_v50, %v437_v51 }
  0x94   : > { %434 = vst [vmem:[%s1207_s26 + $0xf0] sm:$0xff] %v402_v32  ;;  %435 = vst [vmem:[%s1207_s26 + $0xf8] sm:$0xff] %v403_v37  ;;  %v453_v34 = vmax.f32 %v438_v52, %v439_v57  ;;  %v444_v35 = vmax.f32 %v388_v0, %v389_v5  ;;  %v445_v36 = vmax.f32 %v390_v6, %v391_v9 }
  0x95   : > { %829 = shalt.err (!%p826_p6)
}
  0x96   : > { %s830_s23 = scalar_lea.hbm %s1419_s10, 4096  ;;  %s834_s29 = scalar_lea.hbm %s1607_s3, 8192 }
  0x97   : > { %p831_p12 = scmp.ne.s32.totalorder %s1419_s10, %s830_s23  ;;  %p835_p11 = scmp.lt.u32.totalorder %s1419_s10, %s1607_s3 }
  0x98   : > { %p836_p7 = scmp.lt.u32.totalorder %s834_s29, %s830_s23  ;;  %p838_p8 = scmp.lt.u32.totalorder %s830_s23, %s1419_s10 }
  0x99   : > { %p832_p13 = pnand %p831_p12, %p1631_p4 }
  0x9a   : > { %p837_p3 = por %p836_p7, %p835_p11 }
  0x9b   : > { %p833_p1 = pneg %p832_p13 }
  0x9c   : > { %p839_p5 = por %p838_p8, %p837_p3 }
  0x9e   : > { %p840_p10 = pnand %p839_p5, %p833_p1 }
  0xa0   : > { %843 = shalt.err (!%p840_p10)
}
  0xa1   : > { %s926_s20 = smov 256   ;;  %s927_s12 = smov 16   ;;  %v454_v40 = vmax.f32 %v440_v26, %v441_v27  ;;  %v455_v41 = vmax.f32 %v442_v28, %v443_v29  ;;  %v1632_v42 = vmax.f32 %v1332_v54, 0.0  ;;  %v1633_v43 = vmax.f32 %v1329_v53, 0.0  ;;  %460 = vst [vmem:[%s1469_s8] sm:$0xff] %v452_v33  ;;  %461 = vst [vmem:[%s1469_s8 + $0x8] sm:$0xff] %v453_v34 }
  0xa2   : > { %662 = dma.vmem_to_hbm [thread:$0]  (%p1631_p4), %s1425_s13, 4096, %s1419_s10, %s469_s11, %s926_s20, %s926_s20, %s927_s12   ;;  %v1634_v47 = vmax.f32 %v1338_v56, 0.0  ;;  %v1635_v48 = vmax.f32 %v1335_v55, 0.0  ;;  %v456_v58 = vmax.f32 %v444_v35, %v445_v36  ;;  %v448_v59 = vmax.f32 %v396_v16, %v397_v17 }
  0xa3   : > { %v446_v46 = vmax.f32 %v1633_v43, %v1632_v42  ;;  %s651_s6 = sshll.u32 %s977_s19, 10  ;;  %v449_v60 = vmax.f32 %v398_v30, %v399_v31  ;;  %v450_v61 = vmax.f32 %v400_v8, %v401_v11  ;;  %462 = vst [vmem:[%s1469_s8 + $0x10] sm:$0xff] %v454_v40  ;;  %463 = vst [vmem:[%s1469_s8 + $0x18] sm:$0xff] %v455_v41  ;;  %s474_s11 = scalar_lea.sflag [#allocation10], %s1125_s9 }
  0xa4   : > { %v447_v49 = vmax.f32 %v1635_v48, %v1634_v47  ;;  %v451_v2 = vmax.f32 %v402_v32, %v403_v37  ;;  %464 = vst [vmem:[%s1469_s8 + $0x20] sm:$0xff] %v456_v58  ;;  %s1557_s10 = scalar_lea.hbm %s1608_s4, %s651_s6  ;;  %s844_s22 = scalar_lea.vmem %s1545_s30, 1024 }
  0xa5   : > { %v458_v3 = vmax.f32 %v448_v59, %v449_v60  ;;  %p845_p2 = scmp.ne.s32.totalorder %s1545_s30, %s844_s22  ;;  %s928_s5 = smov [#allocation9]  }
  0xa6   : > { %v457_v1 = vmax.f32 %v446_v46, %v447_v49  ;;  %v459_v4 = vmax.f32 %v450_v61, %v451_v2  ;;  %s848_s23 = sshll.u32 %s928_s5, 4  ;;  %s849_s23 = int_to_ptr.vmem [resolvable:$false] %s848_s23 }
  0xa7   : > { %466 = vst [vmem:[%s1469_s8 + $0x30] sm:$0xff] %v458_v3  ;;  %p846_p0 = pnand %p845_p2, %p1631_p4  ;;  %s850_s25 = scalar_lea.vmem %s849_s23, 2048 }
  0xa8   : > { %465 = vst [vmem:[%s1469_s8 + $0x28] sm:$0xff] %v457_v1  ;;  %467 = vst [vmem:[%s1469_s8 + $0x38] sm:$0xff] %v459_v4  ;;  %p851_p6 = scmp.lt.s32.totalorder %s1545_s30, %s849_s23  ;;  %p852_p12 = scmp.lt.s32.totalorder %s850_s25, %s844_s22 }
  0xa9   : > { %p847_p9 = pneg %p846_p0 }
  0xaa   : > { %p853_p13 = por %p852_p12, %p851_p6 }
  0xac   : > { %p854_p1 = pnand %p853_p13, %p847_p9 }
  0xae   : > { %857 = shalt.err (!%p854_p1)
}
  0xaf   : > { %s858_s8 = scalar_lea.hbm %s1557_s10, 1024  ;;  %s862_s7 = scalar_lea.hbm %s1608_s4, 2048 }
  0xb0   : > { %p859_p11 = scmp.ne.s32.totalorder %s1557_s10, %s858_s8  ;;  %p863_p8 = scmp.lt.u32.totalorder %s1557_s10, %s1608_s4 }
  0xb1   : > { %p864_p5 = scmp.lt.u32.totalorder %s862_s7, %s858_s8  ;;  %p866_p2 = scmp.lt.u32.totalorder %s858_s8, %s1557_s10 }
  0xb2   : > { %p860_p7 = pnand %p859_p11, %p1631_p4 }
  0xb3   : > { %p865_p10 = por %p864_p5, %p863_p8 }
  0xb4   : > { %p861_p3 = pneg %p860_p7 }
  0xb5   : > { %p867_p0 = por %p866_p2, %p865_p10 }
  0xb7   : > { %p868_p9 = pnand %p867_p0, %p861_p3 }
  0xb9   : > { %871 = shalt.err (!%p868_p9)
}
  0xba   : > { %s929_s12 = smov 128   ;;  %s930_s6 = smov 8  }
  0xbb   : > { %663 = dma.vmem_to_hbm [thread:$0]  (%p1631_p4), %s1545_s30, 1024, %s1557_s10, %s474_s11, %s929_s12, %s929_s12, %s930_s6  }
  0xbc PF: > { %s518_s19 = sand.u32 1, %s906_s15   ;;  %p1636_p6 = scmp.ne.s32.totalorder %s1621_s28, 0 }
  0xbd   : > { %p1637_p12 = scmp.ge.s32.totalorder %s918_s18, 2  ;;  %s519_s13 = scalar_lea.sflag [#allocation4], %s518_s19 }
  0xbf   : > { %p678_p13 = pnand %p1637_p12, %p1636_p6 }
  0xc1   : > { %897 = dma.done.wait (!%p678_p13), %s519_s13, 4096  }
  0xc2   : > { %899 = vsyncadd (!%p678_p13), %s519_s13, 4294963200  ;;  %s528_s22 = scalar_lea.sflag [#allocation10], %s518_s19 }
  0xc3   : > { %901 = dma.done.wait (!%p678_p13), %s528_s22, 1024  }
  0xc4   : > { %903 = vsyncadd (!%p678_p13), %s528_s22, 4294966272  ;;  %p22_p4 = scmp.ge.s32.totalorder %s981_s21, 4   ;;  %s1638_s15 = smov %s910_s16 }
  0xc5   : > { %s1639_s16 = smov %s914_s17  ;;  %s1640_s17 = smov %s993_s24 }
  0xc6   : > { %s1641_s18 = smov %s981_s21  ;;  %24 = sbr.rel (!%p22_p4) target bundleno = 8 (0x8), region = 102 }
  0xcd   :  { %533 = vsyncpa [#allocation3], 1 }
  0xce   :  { %535 = vsyncpa [#allocation3 + $0x1], 1 }
  0xcf   :  { %536 = vsyncpa [#allocation6], 1 }
  0xd0   :  { %537 = vsyncpa [#allocation4], 1 }
  0xd1   :  { %539 = vsyncpa [#allocation4 + $0x1], 1 }
  0xd2   :  { %540 = vsyncpa [#allocation10], 1 }
  0xd3   :  { %542 = vsyncpa [#allocation10 + $0x1], 1 }

// kernel: down_forward.2
= control target key start
LH: loop header
LB: loop body
LE: loop exit
PB: predicated region body
PF: predicated region fallthrough
CT: control target
= control target key end

     0   :  { %9 = vsyncpa [#allocation3], 0  ;;  %s5657_s0 = inlined_call_operand.hbm [shape: bf16[2,18,18,4], index: 0, kind: input, shape index: {}]   ;;  %s5658_s1 = inlined_call_operand.hbm [shape: bf16[9,4,128], index: 1, kind: input, shape index: {}]   ;;  %s5659_s2 = inlined_call_operand.hbm [shape: f32[2,16,16,128], index: 2, kind: output, shape index: {0}]   ;;  %s5660_s3 = inlined_call_operand.hbm [shape: f32[2,2,128], index: 3, kind: output, shape index: {1}]  }
   0x1   :  { %11 = vsyncpa [#allocation3 + $0x1], 0 }
   0x2   :  { %12 = vsyncpa [#allocation6], 0 }
   0x3   :  { %13 = vsyncpa [#allocation4], 0 }
   0x4   :  { %15 = vsyncpa [#allocation4 + $0x1], 0 }
   0x5   :  { %16 = vsyncpa [#allocation9], 0 }
   0x6   :  { %18 = vsyncpa [#allocation9 + $0x1], 0  ;;  %s4464_s12 = smov 0   ;;  %s4466_s13 = smov 0  }
   0x7   :  { %s4468_s14 = smov 0   ;;  %s4470_s15 = smov 0  }
   0x8 LB: > { %s4485_s16 = sadd.s32 4294967295, %s4432_s15   ;;  %s3219_s17 = sadd.s32 4294967294, %s4432_s15   ;;  %s4432_s15 = sphi %s4470_s15, %s5754_s15   ;;  %s4428_s14 = sphi %s4468_s14, %s5753_s14   ;;  %s4424_s13 = sphi %s4466_s13, %s5752_s13   ;;  %s4420_s12 = sphi %s4464_s12, %s5751_s12  }
   0x9   : > { %p44_p0 = scmp.ne.s32.totalorder %s4424_s13, %s4420_s12  ;;  %p5661_p1 = scmp.eq.s32.totalorder %s4485_s16, 0 }
   0xa   : > { %p95_p3 = scmp.eq.s32.totalorder %s3219_s17, 1  ;;  %p3220_p5 = scmp.ge.s32.totalorder %s4432_s15, 1 }
   0xb   : > { %p4494_p4 = por %p5661_p1, %p44_p0  ;;  %p128_p7 = scmp.lt.s32.totalorder %s4432_s15, 3 }
   0xc   : > { %p4499_p6 = por %p95_p3, %p44_p0  ;;  %s4434_s21 = smov [#allocation5]  }
   0xd   : > { %s5694_s18 = scalar_select %p4494_p4, 1, 0 }
   0xe   : > { %s5695_s19 = scalar_select %p4499_p6, 1, 0 }
   0xf   : > { %p4504_p8 = pnand %p3220_p5, %p128_p7  ;;  %s140_s22 = sshll.u32 %s4434_s21, 4  ;;  %s4508_s22 = int_to_ptr.vmem [resolvable:$true] %s140_s22 }
  0x10   : > { %s4520_s24 = sadd.s32 1, %s4432_s15   ;;  %s31_s25 = sadd.s32 1, %s4428_s14 }
  0x11   : > { %s5696_s20 = scalar_select %p4504_p8, 1, 0 }
  0x12   : > { %p4192_p9 = pneg %p4504_p8  ;;  %s28_s26 = ssub.s32 %s4432_s15, %s4520_s24 }
  0x13   : > { %s4272_s29 = scalar_lea.hbm %s5658_s1, 288 }
  0x14   : > { %p4515_p11 = pnand %p4192_p9, %p5661_p1  ;;  %p4273_p12 = scmp.ne.s32.totalorder %s5658_s1, %s4272_s29 }
  0x15   : > { %p4279_p5 = scmp.lt.u32.totalorder %s4272_s29, %s5658_s1 }
  0x16   : > { %p4274_p13 = pneg %p4515_p11 }
  0x18   : > { %p4275_p0 = pnand %p4274_p13, %p4273_p12 }
  0x1a   : > { %p4276_p3 = pneg %p4275_p0 }
  0x1c   : > { %p4281_p7 = pnand %p4279_p5, %p4276_p3 }
  0x1e   : > { %4284 = shalt.err (!%p4281_p7)
}
  0x1f   : > { %s4285_s7 = scalar_lea.vmem %s4508_s22, 288  ;;  %p4293_p2 = scmp.lt.s32.totalorder %s4508_s22, %s4508_s22 }
  0x20   : > { %p4286_p9 = scmp.ne.s32.totalorder %s4508_s22, %s4285_s7  ;;  %p4294_p6 = scmp.lt.s32.totalorder %s4285_s7, %s4285_s7 }
  0x22   : > { %p4288_p10 = pnand %p4286_p9, %p4274_p13  ;;  %p4295_p4 = por %p4294_p6, %p4293_p2 }
  0x24   : > { %p4289_p1 = pneg %p4288_p10 }
  0x26   : > { %p4296_p8 = pnand %p4295_p4, %p4289_p1 }
  0x28   : > { %4299 = shalt.err (!%p4296_p8)
}
  0x29   : > { %s4435_s8 = smov 32   ;;  %s4436_s9 = smov 2  }
  0x2a   : > { %4195 = dma.hbm_to_vmem [thread:$0]  (!%p4515_p11), %s5658_s1, 288, %s4508_s22, [#allocation6], %s4435_s8, %s4435_s8, %s4436_s9  }
  0x2b   : > { %p29_p2 = scmp.eq.s32.totalorder %s28_s26, 0  ;;  %p38_p1 = scmp.ne.s32.totalorder %s4428_s14, %s4424_s13 }
  0x2c   : > { %p39_p4 = scmp.eq.s32.totalorder %s4432_s15, 0  ;;  %p4208_p6 = scmp.lt.s32.totalorder %s4432_s15, 2 }
  0x2d   : > { %s4551_s17 = scalar_select %p29_p2, %s4428_s14, %s31_s25  }
  0x2e   : > { %p40_p8 = por %p39_p4, %p38_p1  ;;  %p5698_p10 = scmp.eq.s32.totalorder %s4485_s16, 1 }
  0x2f   : > { %s154_s27 = sand.u32 1, %s4428_s14   ;;  %s4180_s28 = smul.u32 3456, %s4432_s15 }
  0x30   : > { %p4555_p12 = por %p5698_p10, %p38_p1  ;;  %s4179_s29 = smul.u32 216, %s154_s27 }
  0x31   : > { %s4564_s4 = scalar_lea.hbm %s5657_s0, %s4180_s28  ;;  %p4566_p11 = pnand %p4208_p6, %p40_p8 }
  0x32   : > { %s158_s25 = scalar_lea.vmem [#allocation2], %s4179_s29  ;;  %s4572_s5 = scalar_lea.sflag [#allocation3], %s154_s27 }
  0x33   : > { %s165_s26 = sshll.u32 %s158_s25, 4  ;;  %s4300_s6 = scalar_lea.hbm %s4564_s4, 3456  ;;  %s4570_s26 = int_to_ptr.vmem [resolvable:$true] %s165_s26 }
  0x34   : > { %p4301_p13 = scmp.ne.s32.totalorder %s4564_s4, %s4300_s6  ;;  %p4302_p0 = pneg %p4566_p11 }
  0x35   : > { %s4305_s9 = scalar_lea.hbm %s5657_s0, 6912  ;;  %p4306_p7 = scmp.lt.u32.totalorder %s4564_s4, %s5657_s0 }
  0x36   : > { %p4303_p3 = pnand %p4302_p0, %p4301_p13  ;;  %p4307_p9 = scmp.lt.u32.totalorder %s4305_s9, %s4300_s6 }
  0x37   : > { %p4309_p1 = scmp.lt.u32.totalorder %s4300_s6, %s4564_s4 }
  0x38   : > { %p4304_p5 = pneg %p4303_p3  ;;  %p4308_p2 = por %p4307_p9, %p4306_p7 }
  0x3a   : > { %p4310_p4 = por %p4309_p1, %p4308_p2 }
  0x3c   : > { %p4311_p6 = pnand %p4310_p4, %p4304_p5 }
  0x3e   : > { %4314 = shalt.err (!%p4311_p6)
}
  0x3f   : > { %s4315_s27 = scalar_lea.vmem %s4570_s26, 3456  ;;  %s4437_s28 = smov [#allocation2]  }
  0x40   : > { %p4316_p8 = scmp.ne.s32.totalorder %s4570_s26, %s4315_s27  ;;  %s4320_s29 = sshll.u32 %s4437_s28, 4  ;;  %s4321_s29 = int_to_ptr.vmem [resolvable:$false] %s4320_s29 }
  0x41   : > { %s4322_s23 = scalar_lea.vmem %s4321_s29, 6912  ;;  %p4323_p3 = scmp.lt.s32.totalorder %s4570_s26, %s4321_s29 }
  0x42   : > { %p4318_p10 = pnand %p4316_p8, %p4302_p0  ;;  %p4324_p7 = scmp.lt.s32.totalorder %s4322_s23, %s4315_s27 }
  0x44   : > { %p4319_p13 = pneg %p4318_p10  ;;  %p4325_p9 = por %p4324_p7, %p4323_p3 }
  0x46   : > { %p4326_p2 = pnand %p4325_p9, %p4319_p13 }
  0x48   : > { %4329 = shalt.err (!%p4326_p2)
}
  0x49   : > { %s4438_s30 = smov 64   ;;  %s4439_s25 = smov 4  }
  0x4a   : > { %4199 = dma.hbm_to_vmem [thread:$0]  (!%p4566_p11), %s4564_s4, 3456, %s4570_s26, %s4572_s5, %s4438_s30, %s4438_s30, %s4439_s25  }
  0x4b   : > { %p5701_p0 = scmp.ne.s32.totalorder %s5696_s20, 0 }
  0x4d   : > { %177 = sbr.rel (%p5701_p0) target bundleno = 670 (0x29e), region = 28 }
  0x54   : > { %s4603_s6 = sand.u32 1, %s4424_s13   ;;  %p5702_p5 = scmp.ne.s32.totalorder %s5694_s18, 0 }
  0x55   : > { %s4181_s7 = smul.u32 216, %s4603_s6  ;;  %s180_s8 = scalar_lea.sflag [#allocation3], %s4603_s6 }
  0x57   : > { %s4607_s9 = scalar_lea.vmem [#allocation2], %s4181_s7 }
  0x58   : > { %4403 = dma.done.wait (%p5702_p5), %s180_s8, 3456  }
  0x59   : > { %4405 = vsyncadd (%p5702_p5), %s180_s8, 4294963840  ;;  %p5703_p11 = scmp.eq.s32.totalorder %s4485_s16, 0 }
  0x5b   : > { %4407 = dma.done.wait (%p5703_p11), [#allocation6], 288   ;;  %p5704_p1 = pmov %p5703_p11 }
  0x5c   : > { %vm757_vm0 = vcmask 1041408   ;;  %vm271_vm1 = vsmask.f32 3328  ;;  %vm272_vm2 = vsmask.f32 7440  ;;  %vm708_vm3 = vcmask 31744  }
  0x5d   : > { %4409 = vsyncadd (%p5704_p1), [#allocation6], 4294967008  ;;  %v659_v0 = vld [vmem:[#allocation5 + $0x2] sm:$0x3]  ;;  %v1870_v1 = vld [vmem:[#allocation5 + $0x8] sm:$0x3] }
  0x5e   : > { %v4618_v2 = vld [vmem:[%s4607_s9] sm:$0xf]  ;;  %4169 = vmatprep.subr.msk.bf16.mxu1 %vm757_vm0, %v659_v0  ;;  %4173 = vmatprep.subr.msk.bf16.mxu0 %vm757_vm0, %v1870_v1  ;;  %v759_v3 = vsel %vm757_vm0, %v659_v0, 0  ;;  %v4624_v4 = vsel %vm757_vm0, %v1870_v1, 0  ;;  %v4627_v5 = vld [vmem:[%s4607_s9 + $0x4] sm:$0xf]  ;;  %vm4656_vm4 = vmor %vm271_vm1, %vm272_vm2 }
  0x5f   : > { %5705 = vst [vmem:[#allocation14_spill] sm:$0xff] %v4624_v4  ;;  %v218_v6 = vld [vmem:[%s4607_s9 + $0x8] sm:$0x1]  ;;  %3606 = vmatpush3.bf16.msra.mxu1 %v759_v3  ;;  %3742 = vmatpush3.bf16.msra.mxu0 %v4624_v4  ;;  %v275_v7 = vshrl.u32 %v4618_v2, 16  ;;  %v278_v8 = vshll.u32 %v4618_v2, 16  ;;  %v284_v9 = vshll.u32 %v4627_v5, 16 }
  0x60   : > { %v288_v10 = vshrl.u32 %v4627_v5, 16  ;;  %v270_v11 = vld [vmem:[#allocation5] sm:$0x3]  ;;  %v294_v12 = vshll.u32 %v218_v6, 16  ;;  %v4637_v13 = vld [vmem:[%s4607_s9 + $0xc] sm:$0xf] }
  0x61   : > { %4170 = vmatprep.subr.msk.bf16.mxu1 %vm757_vm0, %v270_v11  ;;  %v4640_v14 = vld [vmem:[%s4607_s9 + $0x10] sm:$0xf]  ;;  %v277_v15 = vrot.slane %v275_v7, 4  ;;  %v280_v16 = vrot.slane %v278_v8, 5  ;;  %v286_v17 = vrot.slane %v284_v9, 5  ;;  %v299_v21 = vshrl.u32 %v4637_v13, 16 }
  0x62   : > { %v290_v18 = vrot.slane %v288_v10, 4  ;;  %v4643_v19 = vld [vmem:[%s4607_s9 + $0x14] sm:$0x1]  ;;  %v296_v20 = vrot.slane %v294_v12, 5  ;;  %v302_v22 = vshll.u32 %v4637_v13, 16  ;;  %v308_v23 = vshll.u32 %v4640_v14, 16 }
  0x63   : > { %v2082_v24 = vld [vmem:[#allocation5 + $0xa] sm:$0x3]  ;;  %v281_v25 = vor.u32 %v280_v16, %v277_v15  ;;  %v312_v27 = vshrl.u32 %v4640_v14, 16  ;;  %v318_v28 = vshll.u32 %v4643_v19, 16  ;;  %v301_v31 = vrot.slane %v299_v21, 4  ;;  %s3226_s18 = sshll.u32 %s4603_s6, 8 }
  0x64   : > { %v291_v26 = vor.u32 %v290_v18, %v286_v17  ;;  %4175 = vmatprep.subr.msk.bf16.mxu0 %vm757_vm0, %v2082_v24  ;;  %v4652_v29 = vld [vmem:[%s4607_s9 + $0x18] sm:$0xf]  ;;  %v304_v32 = vrot.slane %v302_v22, 5  ;;  %v310_v33 = vrot.slane %v308_v23, 5  ;;  %v4662_v34 = vcombine.low %v4637_v13, %v4640_v14  ;;  %v4665_v39 = vld [vmem:[%s4607_s9 + $0x1c] sm:$0xf] }
  0x65   : > { %v282_v35 = vrot.slane %v281_v25, 4  ;;  %v314_v37 = vrot.slane %v312_v27, 4  ;;  %v320_v38 = vrot.slane %v318_v28, 5  ;;  %v1245_v41 = vrot.slane %v4643_v19, 5  ;;  %v4670_v43 = vld [vmem:[%s4607_s9 + $0x20] sm:$0x1] }
  0x66   : > { %v292_v36 = vrot.slane %v291_v26, 4  ;;  %v305_v40 = vor.u32 %v304_v32, %v301_v31  ;;  %v1051_v42 = vsel %vm757_vm0, %v270_v11, 0  ;;  %v323_v44 = vshrl.u32 %v4652_v29, 16  ;;  %v4682_v57 = vld [vmem:[%s4607_s9 + $0x24] sm:$0xf]  ;;  %s5536_s20 = scalar_lea.vmem [#allocation7], %s3226_s18 }
  0x67   : > { %v287_v45 = vsel %vm4656_vm4, %v282_v35, %v286_v17  ;;  %v315_v47 = vor.u32 %v314_v37, %v310_v33  ;;  %v326_v48 = vshll.u32 %v4652_v29, 16  ;;  %v332_v52 = vshll.u32 %v4665_v39, 16  ;;  %v4690_v62 = vld [vmem:[%s4607_s9 + $0x28] sm:$0xf]  ;;  %v4695_v6 = vld [vmem:[%s4607_s9 + $0x2c] sm:$0x1] }
  0x68   : > { %v297_v46 = vsel %vm4656_vm4, %v292_v36, %v296_v20  ;;  %v306_v50 = vrot.slane %v305_v40, 4  ;;  %v325_v51 = vrot.slane %v323_v44, 4  ;;  %v336_v55 = vshrl.u32 %v4665_v39, 16  ;;  %v4698_v7 = vld [vmem:[%s4607_s9 + $0x30] sm:$0xf]  ;;  %s3451_s4 = sshll.u32 %s4485_s16, 12 }
  0x69   : > { %v3228_v49 = vcombine.low %v287_v45, %v297_v46  ;;  %v316_v53 = vrot.slane %v315_v47, 4  ;;  %v328_v54 = vrot.slane %v326_v48, 5  ;;  %v342_v56 = vshll.u32 %v4670_v43, 16  ;;  %v4709_v22 = vld [vmem:[%s4607_s9 + $0x34] sm:$0xf]  ;;  %s3091_s22 = sshll.u32 %s5536_s20, 4  ;;  %s5577_s10 = scalar_lea.hbm %s5659_s2, %s3451_s4  ;;  %s5579_s22 = int_to_ptr.vmem [resolvable:$true] %s3091_s22 }
  0x6a   : > { %v311_v58 = vsel %vm4656_vm4, %v306_v50, %v310_v33  ;;  %v334_v59 = vrot.slane %v332_v52, 5  ;;  %v1249_v60 = vrot.slane %v4665_v39, 5  ;;  %v1252_v61 = vrot.slane %v4670_v43, 5  ;;  %v4715_v28 = vld [vmem:[%s4607_s9 + $0x38] sm:$0x1]  ;;  %s3073_s11 = scalar_lea.sflag [#allocation4], %s4603_s6 }
  0x6b   : > { %3607 = vmatprep.mubr.msk.bf16.mxu1 %vm708_vm3, %v3228_v49  ;;  %v321_v63 = vsel %vm4656_vm4, %v316_v53, %v320_v38  ;;  %v329_v0 = vor.u32 %v328_v54, %v325_v51  ;;  %v338_v1 = vrot.slane %v336_v55, 4  ;;  %v344_v3 = vrot.slane %v342_v56, 5  ;;  %v4719_v36 = vld [vmem:[%s4607_s9 + $0x3c] sm:$0xf]  ;;  %v4729_v48 = vld [vmem:[%s4607_s9 + $0x40] sm:$0xf] }
  0x6c   : > { %v3229_v8 = vcombine.low %v311_v58, %v321_v63  ;;  %v2090_v9 = vsel %vm757_vm0, %v2082_v24, 0  ;;  %v347_v10 = vshrl.u32 %v4682_v57, 16  ;;  %v350_v11 = vshll.u32 %v4682_v57, 16  ;;  %v4732_v52 = vld [vmem:[%s4607_s9 + $0x44] sm:$0x1]  ;;  %s4330_s27 = scalar_lea.vmem %s5579_s22, 4096 }
  0x6d   : > { %v330_v12 = vrot.slane %v329_v0, 4  ;;  %v339_v15 = vor.u32 %v338_v1, %v334_v59  ;;  %v356_v16 = vshll.u32 %v4690_v62, 16  ;;  %v360_v17 = vshrl.u32 %v4690_v62, 16  ;;  %v4745_v63 = vld [vmem:[#allocation5 + $0xc] sm:$0x3]  ;;  %p4331_p4 = scmp.ne.s32.totalorder %s5579_s22, %s4330_s27  ;;  %s4440_s28 = smov [#allocation7]  }
  0x6e   : > { %3743 = vmatprep.mubr.msk.bf16.mxu0 %vm708_vm3, %v3229_v8  ;;  %3608 = vmatmul.mubr.msk.bf16.vlgmr.msra.gmra.mrb[0].mxu1 %vm708_vm3, %v3229_v8  ;;  %v349_v18 = vrot.slane %v347_v10, 4  ;;  %v352_v20 = vrot.slane %v350_v11, 5  ;;  %v366_v21 = vshll.u32 %v4695_v6, 16  ;;  %v371_v23 = vshrl.u32 %v4698_v7, 16  ;;  %s4334_s29 = sshll.u32 %s4440_s28, 4  ;;  %s4335_s29 = int_to_ptr.vmem [resolvable:$false] %s4334_s29 }
  0x6f   : > { %3640 = vmatpush3.bf16.msra.mxu1 %v1051_v42  ;;  %v335_v24 = vsel %vm4656_vm4, %v330_v12, %v334_v59  ;;  %v340_v25 = vrot.slane %v339_v15, 4  ;;  %v358_v26 = vrot.slane %v356_v16, 5  ;;  %v362_v27 = vrot.slane %v360_v17, 4  ;;  %v4743_v59 = vld [vmem:[%s4607_s9 + $0x48] sm:$0xf]  ;;  %p4332_p6 = pnand %p4331_p4, %p4555_p12  ;;  %s4336_s23 = scalar_lea.vmem %s4335_s29, 8192 }
  0x70   : > { %v353_v31 = vor.u32 %v352_v20, %v349_v18  ;;  %v368_v32 = vrot.slane %v366_v21, 5  ;;  %v373_v33 = vrot.slane %v371_v23, 4  ;;  %v374_v35 = vshll.u32 %v4698_v7, 16  ;;  %v4754_v16 = vld [vmem:[%s4607_s9 + $0x4c] sm:$0xf]  ;;  %p4337_p10 = scmp.lt.s32.totalorder %s5579_s22, %s4335_s29  ;;  %p4338_p13 = scmp.lt.s32.totalorder %s4336_s23, %s4330_s27 }
  0x71   : > { %v345_v37 = vsel %vm4656_vm4, %v340_v25, %v344_v3  ;;  %v363_v38 = vor.u32 %v362_v27, %v358_v26  ;;  %v380_v40 = vshll.u32 %v4709_v22, 16  ;;  %v384_v42 = vshrl.u32 %v4709_v22, 16  ;;  %v4767_v25 = vld [vmem:[%s4607_s9 + $0x50] sm:$0x1]  ;;  %v4771_v27 = vld [vmem:[%s4607_s9 + $0x54] sm:$0xf]  ;;  %p4333_p8 = pneg %p4332_p6 }
  0x72   : > { %v4725_v44 = vcombine.low %v335_v24, %v345_v37  ;;  %v354_v45 = vrot.slane %v353_v31, 4  ;;  %v376_v46 = vrot.slane %v374_v35, 5  ;;  %v390_v47 = vshll.u32 %v4715_v28, 16  ;;  %p4339_p3 = por %p4338_p13, %p4337_p10 }
  0x73   : > { %v364_v49 = vrot.slane %v363_v38, 4  ;;  %v382_v50 = vrot.slane %v380_v40, 5  ;;  %v386_v51 = vrot.slane %v384_v42, 4  ;;  %v395_v53 = vshrl.u32 %v4719_v36, 16 }
  0x74   : > { %5708 = vst [vmem:[#allocation15_spill] sm:$0xff] %v4725_v44  ;;  %3744 = vmatmul.mubr.msk.bf16.vlgmr.msra.gmra.mrb[0].mxu0 %vm708_vm3, %v4725_v44  ;;  %3611 = vmatprep.mubr.msk.bf16.mxu1 %vm708_vm3, %v4725_v44  ;;  %v359_v54 = vsel %vm4656_vm4, %v354_v45, %v358_v26  ;;  %v377_v55 = vor.u32 %v376_v46, %v373_v33  ;;  %v392_v56 = vrot.slane %v390_v47, 5  ;;  %v398_v58 = vshll.u32 %v4719_v36, 16  ;;  %v4779_v45 = vld [vmem:[%s4607_s9 + $0x58] sm:$0xf]  ;;  %p4340_p7 = pnand %p4339_p3, %p4333_p8 }
  0x75   : > { %3776 = vmatpush3.bf16.msra.mxu0 %v2090_v9  ;;  %v369_v0 = vsel %vm4656_vm4, %v364_v49, %v368_v32  ;;  %v387_v1 = vor.u32 %v386_v51, %v382_v50  ;;  %v397_v3 = vrot.slane %v395_v53, 4  ;;  %v404_v8 = vshll.u32 %v4729_v48, 16 }
  0x76   : > { %v4750_v10 = vcombine.low %v359_v54, %v369_v0  ;;  %v378_v11 = vrot.slane %v377_v55, 4  ;;  %v400_v12 = vrot.slane %v398_v58, 5  ;;  %v408_v15 = vshrl.u32 %v4729_v48, 16  ;;  %4176 = vmatprep.subr.msk.bf16.mxu0 %vm757_vm0, %v4745_v63  ;;  %v4791_v55 = vld [vmem:[%s4607_s9 + $0x5c] sm:$0x1] }
  0x77   : > { %v388_v9 = vrot.slane %v387_v1, 4  ;;  %v406_v17 = vrot.slane %v404_v8, 5  ;;  %v414_v18 = vshll.u32 %v4732_v52, 16  ;;  %v419_v20 = vshrl.u32 %v4743_v59, 16  ;;  %v4796_v8 = vld [vmem:[%s4607_s9 + $0x60] sm:$0xf] }
  0x78   : > { %5709 = vst [vmem:[#allocation16_spill] sm:$0xff] %v4750_v10  ;;  %3747 = vmatprep.mubr.msk.bf16.mxu0 %vm708_vm3, %v4750_v10  ;;  %3612 = vmatmul.mubr.msk.bf16.gmra.mrb[4].mxu1 %vm708_vm3, %v4750_v10  ;;  %v383_v21 = vsel %vm4656_vm4, %v378_v11, %v382_v50  ;;  %v401_v23 = vor.u32 %v400_v12, %v397_v3  ;;  %v410_v24 = vrot.slane %v408_v15, 4  ;;  %v422_v26 = vshll.u32 %v4743_v59, 16 }
  0x79   : > { %v393_v31 = vsel %vm4656_vm4, %v388_v9, %v392_v56  ;;  %v416_v32 = vrot.slane %v414_v18, 5  ;;  %v421_v33 = vrot.slane %v419_v20, 4  ;;  %v428_v35 = vshll.u32 %v4754_v16, 16 }
  0x7a   : > { %vm1230_vm5 = vcmask 1042432   ;;  %vm1231_vm6 = vcmask 1046532   ;;  %v4776_v37 = vcombine.low %v383_v21, %v393_v31  ;;  %v402_v38 = vrot.slane %v401_v23, 4 }
  0x7b   : > { %v411_v40 = vor.u32 %v410_v24, %v406_v17  ;;  %v424_v42 = vrot.slane %v422_v26, 5  ;;  %v430_v46 = vrot.slane %v428_v35, 5  ;;  %v432_v47 = vshrl.u32 %v4754_v16, 16  ;;  %vm4834_vm7 = vmor %vm1230_vm5, %vm1231_vm6 }
  0x7c   : > { %5710 = vst [vmem:[#allocation17_spill] sm:$0xff] %v4776_v37  ;;  %v438_v49 = vshll.u32 %v4767_v25, 16  ;;  %v443_v50 = vshrl.u32 %v4771_v27, 16  ;;  %3748 = vmatmul.mubr.msk.bf16.gmra.mrb[4].mxu0 %vm708_vm3, %v4776_v37  ;;  %3615 = vmatprep.mubr.msk.bf16.mxu1 %vm708_vm3, %v4776_v37  ;;  %v407_v51 = vsel %vm4656_vm4, %v402_v38, %v406_v17  ;;  %v446_v56 = vshll.u32 %v4771_v27, 16  ;;  %v4802_v17 = vld [vmem:[%s4607_s9 + $0x64] sm:$0xf] }
  0x7d   : > { %v412_v53 = vrot.slane %v411_v40, 4  ;;  %v425_v54 = vor.u32 %v424_v42, %v421_v33  ;;  %v434_v58 = vrot.slane %v432_v47, 4  ;;  %v452_v3 = vshll.u32 %v4779_v45, 16  ;;  %v4810_v33 = vld [vmem:[%s4607_s9 + $0x68] sm:$0x1] }
  0x7e   : > { %v440_v0 = vrot.slane %v438_v49, 5  ;;  %v445_v1 = vrot.slane %v443_v50, 4  ;;  %v448_v15 = vrot.slane %v446_v56, 5  ;;  %v456_v9 = vshrl.u32 %v4779_v45, 16 }
  0x7f   : > { %v417_v11 = vsel %vm4656_vm4, %v412_v53, %v416_v32  ;;  %v426_v12 = vrot.slane %v425_v54, 4  ;;  %v435_v20 = vor.u32 %v434_v58, %v430_v46  ;;  %v454_v21 = vrot.slane %v452_v3, 5 }
  0x80   : > { %v4804_v18 = vcombine.low %v407_v51, %v417_v11  ;;  %v462_v23 = vshll.u32 %v4791_v55, 16  ;;  %v449_v26 = vor.u32 %v448_v15, %v445_v1  ;;  %v458_v31 = vrot.slane %v456_v9, 4  ;;  %v4821_v51 = vld [vmem:[%s4607_s9 + $0x6c] sm:$0xf]  ;;  %v4826_v1 = vld [vmem:[#allocation5 + $0x4] sm:$0x3] }
  0x81   : > { %v431_v24 = vsel %vm4656_vm4, %v426_v12, %v430_v46  ;;  %v467_v32 = vshrl.u32 %v4796_v8, 16  ;;  %v436_v35 = vrot.slane %v435_v20, 4  ;;  %v470_v40 = vshll.u32 %v4796_v8, 16  ;;  %4171 = vmatprep.subr.msk.bf16.mxu1 %vm757_vm0, %v4826_v1 }
  0x82   : > { %5711 = vst [vmem:[#allocation18_spill] sm:$0xff] %v4804_v18  ;;  %3751 = vmatprep.mubr.msk.bf16.mxu0 %vm708_vm3, %v4804_v18  ;;  %3616 = vmatmul.mubr.msk.bf16.gmra.mrb[8].mxu1 %vm708_vm3, %v4804_v18  ;;  %v464_v38 = vrot.slane %v462_v23, 5  ;;  %v476_v42 = vshll.u32 %v4802_v17, 16  ;;  %v450_v47 = vrot.slane %v449_v26, 4  ;;  %v459_v46 = vor.u32 %v458_v31, %v454_v21  ;;  %v4843_v26 = vld [vmem:[%s4607_s9 + $0x70] sm:$0xf] }
  0x83   : > { %v469_v49 = vrot.slane %v467_v32, 4  ;;  %v480_v50 = vshrl.u32 %v4802_v17, 16  ;;  %v441_v53 = vsel %vm4656_vm4, %v436_v35, %v440_v0  ;;  %v472_v54 = vrot.slane %v470_v40, 5  ;;  %v4852_v32 = vld [vmem:[%s4607_s9 + $0x74] sm:$0x1] }
  0x84   : > { %v478_v56 = vrot.slane %v476_v42, 5  ;;  %v486_v58 = vshll.u32 %v4810_v33, 16  ;;  %v4828_v3 = vcombine.low %v431_v24, %v441_v53  ;;  %v455_v11 = vsel %vm4656_vm4, %v450_v47, %v454_v21 }
  0x85   : > { %v460_v12 = vrot.slane %v459_v46, 4  ;;  %v482_v15 = vrot.slane %v480_v50, 4  ;;  %v473_v0 = vor.u32 %v472_v54, %v469_v49  ;;  %v3293_v23 = vrot.slane %v4637_v13, 9 }
  0x86   : > { %5712 = vst [vmem:[#allocation19_spill] sm:$0xff] %v4828_v3  ;;  %v488_v20 = vrot.slane %v486_v58, 5  ;;  %v1242_v24 = vrot.slane %v4640_v14, 5  ;;  %3752 = vmatmul.mubr.msk.bf16.gmra.mrb[8].mxu0 %vm708_vm3, %v4828_v3  ;;  %3619 = vmatprep.mubr.msk.bf16.mxu1 %vm708_vm3, %v4828_v3  ;;  %v491_v35 = vshrl.u32 %v4821_v51, 16  ;;  %v494_v13 = vshll.u32 %v4821_v51, 16 }
  0x87   : > { %v465_v21 = vsel %vm4656_vm4, %v460_v12, %v464_v38  ;;  %v483_v31 = vor.u32 %v482_v15, %v478_v56  ;;  %v474_v40 = vrot.slane %v473_v0, 4  ;;  %v500_v38 = vshll.u32 %v4843_v26, 16  ;;  %v4874_v12 = vld [vmem:[%s4607_s9 + $0x78] sm:$0xf] }
  0x88   : > { %v4856_v14 = vcombine.low %v455_v11, %v465_v21  ;;  %v1243_v42 = vsel %vm4834_vm7, %v3293_v23, %v1242_v24  ;;  %v1244_v47 = vrot.slane %v1242_v24, 4  ;;  %v493_v49 = vrot.slane %v491_v35, 4 }
  0x89   : > { %v484_v46 = vrot.slane %v483_v31, 4  ;;  %v496_v50 = vrot.slane %v494_v13, 5  ;;  %v479_v53 = vsel %vm4656_vm4, %v474_v40, %v478_v56  ;;  %v504_v58 = vshrl.u32 %v4843_v26, 16  ;;  %v4881_v56 = vld [vmem:[%s4607_s9 + $0x7c] sm:$0xf] }
  0x8a   : > { %5715 = vst [vmem:[#allocation20_spill] sm:$0xff] %v4856_v14  ;;  %3755 = vmatprep.mubr.msk.bf16.mxu0 %vm708_vm3, %v4856_v14  ;;  %3620 = vmatmul.mubr.msk.bf16.gmra.mrb[12].mxu1 %vm708_vm3, %v4856_v14  ;;  %v1246_v54 = vsel %vm4834_vm7, %v1244_v47, %v1245_v41  ;;  %v510_v11 = vshll.u32 %v4852_v32, 16  ;;  %v502_v24 = vrot.slane %v500_v38, 5  ;;  %v3294_v31 = vrot.slane %v4652_v29, 9 }
  0x8b   : > { %v489_v15 = vsel %vm4656_vm4, %v484_v46, %v488_v20  ;;  %v4878_v0 = vcombine.low %v1243_v42, %v1246_v54  ;;  %v497_v23 = vor.u32 %v496_v50, %v493_v49  ;;  %v506_v21 = vrot.slane %v504_v58, 4  ;;  %v4898_v46 = vld [vmem:[%s4607_s9 + $0x80] sm:$0x1]  ;;  %v4912_v54 = vld [vmem:[%s4607_s9 + $0x84] sm:$0xf] }
  0x8c   : > { %v4883_v19 = vcombine.low %v479_v53, %v489_v15  ;;  %v512_v41 = vrot.slane %v510_v11, 5  ;;  %v1251_v13 = vrot.slane %v1249_v60, 4  ;;  %v2296_v20 = vsel %vm757_vm0, %v4745_v63, 0 }
  0x8d   : > { %5716 = vst [vmem:[#allocation21_spill] sm:$0xff] %v4878_v0  ;;  %v498_v35 = vrot.slane %v497_v23, 4  ;;  %v515_v40 = vshrl.u32 %v4874_v12, 16  ;;  %v507_v42 = vor.u32 %v506_v21, %v502_v24  ;;  %v1250_v47 = vsel %vm4834_vm7, %v3294_v31, %v1249_v60 }
  0x8e   : > { %5717 = vst [vmem:[#allocation22_spill] sm:$0xff] %v4883_v19  ;;  %3623 = vmatprep.mubr.msk.bf16.mxu1 %vm708_vm3, %v4883_v19  ;;  %v518_v49 = vshll.u32 %v4874_v12, 16  ;;  %v524_v50 = vshll.u32 %v4881_v56, 16  ;;  %3756 = vmatmul.mubr.msk.bf16.gmra.mrb[12].mxu0 %vm708_vm3, %v4883_v19  ;;  %v1253_v38 = vsel %vm4834_vm7, %v1251_v13, %v1252_v61  ;;  %v528_v60 = vshrl.u32 %v4881_v56, 16 }
  0x8f   : > { %v503_v63 = vsel %vm4656_vm4, %v498_v35, %v502_v24  ;;  %v517_v53 = vrot.slane %v515_v40, 4  ;;  %3777 = vmatprep.mubr.msk.bf16.mxu0 %vm708_vm3, %v4878_v0  ;;  %v508_v58 = vrot.slane %v507_v42, 4  ;;  %v4916_v11 = vcombine.low %v1250_v47, %v1253_v38  ;;  %v4925_v40 = vld [vmem:[%s4607_s9 + $0x88] sm:$0xf]  ;;  %v4928_v42 = vld [vmem:[%s4607_s9 + $0x8c] sm:$0x1] }
  0x90   : > { %v520_v15 = vrot.slane %v518_v49, 5  ;;  %v526_v23 = vrot.slane %v524_v50, 5  ;;  %v530_v24 = vrot.slane %v528_v60, 4  ;;  %v534_v43 = vshll.u32 %v4898_v46, 16 }
  0x91   : > { %5718 = vst [vmem:[#allocation23_spill] sm:$0xff] %v4916_v11  ;;  %v3295_v61 = vrot.slane %v4682_v57, 9  ;;  %v1256_v21 = vrot.slane %v4690_v62, 5  ;;  %v513_v31 = vsel %vm4656_vm4, %v508_v58, %v512_v41  ;;  %v1259_v13 = vrot.slane %v4695_v6, 5 }
  0x92   : > { %v521_v35 = vor.u32 %v520_v15, %v517_v53  ;;  %v539_v47 = vshrl.u32 %v4912_v54, 16  ;;  %v4931_v49 = vcombine.low %v503_v63, %v513_v31  ;;  %v531_v50 = vor.u32 %v530_v24, %v526_v23  ;;  %v4947_v31 = vld [vmem:[%s4607_s9 + $0x90] sm:$0xf] }
  0x93   : > { %v536_v38 = vrot.slane %v534_v43, 5  ;;  %v1257_v60 = vsel %vm4834_vm7, %v3295_v61, %v1256_v21  ;;  %v1258_v19 = vrot.slane %v1256_v21, 4  ;;  %v542_v53 = vshll.u32 %v4912_v54, 16 }
  0x94   : > { %5719 = vst [vmem:[#allocation24_spill] sm:$0xff] %v4931_v49  ;;  %v522_v4 = vrot.slane %v521_v35, 4  ;;  %v541_v41 = vrot.slane %v539_v47, 4  ;;  %3624 = vmatmul.mubr.msk.bf16.gmra.mrb[16].mxu1 %vm708_vm3, %v4931_v49  ;;  %v532_v6 = vrot.slane %v531_v50, 4  ;;  %v548_v58 = vshll.u32 %v4925_v40, 16 }
  0x95   : > { %v552_v63 = vshrl.u32 %v4925_v40, 16  ;;  %v558_v15 = vshll.u32 %v4928_v42, 16  ;;  %v1260_v43 = vsel %vm4834_vm7, %v1258_v19, %v1259_v13  ;;  %v544_v61 = vrot.slane %v542_v53, 5  ;;  %v4949_v35 = vld [vmem:[#allocation5 + $0xe] sm:$0x3] }
  0x96   : > { %v527_v24 = vsel %vm4656_vm4, %v522_v4, %v526_v23  ;;  %v3296_v21 = vrot.slane %v4698_v7, 9  ;;  %5720 = vst [vmem:[#allocation25_spill] sm:$0xff] %v4949_v35  ;;  %3778 = vmatmul.mubr.msk.bf16.vlgmr.msra.gmra.mrb[0].mxu0 %vm708_vm3, %v4916_v11  ;;  %v537_v47 = vsel %vm4656_vm4, %v532_v6, %v536_v38  ;;  %v4955_v50 = vcombine.low %v1257_v60, %v1260_v43  ;;  %v4958_v49 = vld [vmem:[%s4607_s9 + $0x94] sm:$0xf]  ;;  %v4967_v38 = vld [vmem:[%s4607_s9 + $0x98] sm:$0x1] }
  0x97   : > { %v550_v4 = vrot.slane %v548_v58, 5  ;;  %v554_v23 = vrot.slane %v552_v63, 4  ;;  %3810 = vmatpush3.bf16.msra.mxu0 %v2296_v20  ;;  %v4960_v19 = vcombine.low %v527_v24, %v537_v47  ;;  %v545_v13 = vor.u32 %v544_v61, %v541_v41 }
  0x98   : > { %5721 = vst [vmem:[#allocation26_spill] sm:$0xff] %v4955_v50  ;;  %v560_v53 = vrot.slane %v558_v15, 5  ;;  %v1263_v14 = vrot.slane %v4709_v22, 5  ;;  %3781 = vmatprep.mubr.msk.bf16.mxu0 %vm708_vm3, %v4955_v50  ;;  %v1266_v18 = vrot.slane %v4715_v28, 5  ;;  %v563_v60 = vshrl.u32 %v4947_v31, 16  ;;  %4177 = vmatprep.subr.msk.bf16.mxu0 %vm757_vm0, %v4949_v35 }
  0x99   : > { %5722 = vst [vmem:[#allocation27_spill] sm:$0xff] %v4960_v19  ;;  %v555_v3 = vor.u32 %v554_v23, %v550_v4  ;;  %v566_v6 = vshll.u32 %v4947_v31, 16  ;;  %3627 = vmatprep.mubr.msk.bf16.mxu1 %vm708_vm3, %v4960_v19  ;;  %v546_v20 = vrot.slane %v545_v13, 4  ;;  %v572_v28 = vshll.u32 %v4958_v49, 16  ;;  %v4992_v19 = vld [vmem:[%s4607_s9 + $0xa0] sm:$0xf] }
  0x9a   : > { %v1264_v41 = vsel %vm4834_vm7, %v3296_v21, %v1263_v14  ;;  %v1265_v58 = vrot.slane %v1263_v14, 4  ;;  %v565_v15 = vrot.slane %v563_v60, 4  ;;  %v576_v43 = vshrl.u32 %v4958_v49, 16  ;;  %v4985_v21 = vld [vmem:[%s4607_s9 + $0x9c] sm:$0xf] }
  0x9b   : > { %v556_v63 = vrot.slane %v555_v3, 4  ;;  %v568_v24 = vrot.slane %v566_v6, 5  ;;  %v551_v61 = vsel %vm4656_vm4, %v546_v20, %v550_v4  ;;  %v574_v23 = vrot.slane %v572_v28, 5  ;;  %v5058_v50 = vld [vmem:[%s4607_s9 + $0xb8] sm:$0xf] }
  0x9c   : > { %v1267_v47 = vsel %vm4834_vm7, %v1265_v58, %v1266_v18  ;;  %v582_v13 = vshll.u32 %v4967_v38, 16  ;;  %v578_v6 = vrot.slane %v576_v43, 4  ;;  %v3297_v18 = vrot.slane %v4719_v36, 9 }
  0x9d   : > { %v561_v14 = vsel %vm4656_vm4, %v556_v63, %v560_v53  ;;  %v4989_v3 = vcombine.low %v1264_v41, %v1267_v47  ;;  %v569_v60 = vor.u32 %v568_v24, %v565_v15  ;;  %v1270_v20 = vrot.slane %v4729_v48, 5  ;;  %v5002_v41 = vld [vmem:[%s4607_s9 + $0xa4] sm:$0x1] }
  0x9e   : > { %v4994_v37 = vcombine.low %v551_v61, %v561_v14  ;;  %v584_v4 = vrot.slane %v582_v13, 5  ;;  %v579_v28 = vor.u32 %v578_v6, %v574_v23  ;;  %v1273_v53 = vrot.slane %v4732_v52, 5 }
  0x9f   : > { %5723 = vst [vmem:[#allocation28_spill] sm:$0xff] %v4989_v3  ;;  %3782 = vmatmul.mubr.msk.bf16.gmra.mrb[4].mxu0 %vm708_vm3, %v4989_v3  ;;  %v570_v58 = vrot.slane %v569_v60, 4  ;;  %v587_v63 = vshrl.u32 %v4985_v21, 16  ;;  %v1271_v15 = vsel %vm4834_vm7, %v3297_v18, %v1270_v20  ;;  %v1272_v24 = vrot.slane %v1270_v20, 4  ;;  %v5018_v20 = vld [vmem:[%s4607_s9 + $0xa8] sm:$0xf] }
  0xa0   : > { %5724 = vst [vmem:[#allocation29_spill] sm:$0xff] %v4994_v37  ;;  %3628 = vmatmul.mubr.msk.bf16.gmra.mrb[20].mxu1 %vm708_vm3, %v4994_v37  ;;  %v590_v43 = vshll.u32 %v4985_v21, 16  ;;  %v596_v61 = vshll.u32 %v4992_v19, 16  ;;  %v580_v47 = vrot.slane %v579_v28, 4  ;;  %v600_v14 = vshrl.u32 %v4992_v19, 16 }
  0xa1   : > { %v575_v52 = vsel %vm4656_vm4, %v570_v58, %v574_v23  ;;  %v589_v13 = vrot.slane %v587_v63, 4  ;;  %v1274_v60 = vsel %vm4834_vm7, %v1272_v24, %v1273_v53  ;;  %v606_v18 = vshll.u32 %v5002_v41, 16  ;;  %v5026_v28 = vld [vmem:[%s4607_s9 + $0xac] sm:$0xf] }
  0xa2   : > { %v592_v6 = vrot.slane %v590_v43, 5  ;;  %v598_v37 = vrot.slane %v596_v61, 5  ;;  %v585_v10 = vsel %vm4656_vm4, %v580_v47, %v584_v4  ;;  %v5022_v44 = vcombine.low %v1271_v15, %v1274_v60  ;;  %v5035_v4 = vld [vmem:[%s4607_s9 + $0xb0] sm:$0x1] }
  0xa3   : > { %v602_v23 = vrot.slane %v600_v14, 4  ;;  %v3298_v58 = vrot.slane %v4743_v59, 9  ;;  %v5028_v63 = vcombine.low %v575_v52, %v585_v10  ;;  %v608_v24 = vrot.slane %v606_v18, 5 }
  0xa4   : > { %5725 = vst [vmem:[#allocation30_spill] sm:$0xff] %v5022_v44  ;;  %v593_v53 = vor.u32 %v592_v6, %v589_v13  ;;  %v1277_v43 = vrot.slane %v4754_v16, 5  ;;  %3785 = vmatprep.mubr.msk.bf16.mxu0 %vm708_vm3, %v5022_v44  ;;  %v1280_v3 = vrot.slane %v4767_v25, 5  ;;  %v611_v15 = vshrl.u32 %v5018_v20, 16 }
  0xa5   : > { %5726 = vst [vmem:[#allocation31_spill] sm:$0xff] %v5028_v63  ;;  %v603_v61 = vor.u32 %v602_v23, %v598_v37  ;;  %v614_v47 = vshll.u32 %v5018_v20, 16  ;;  %3631 = vmatprep.mubr.msk.bf16.mxu1 %vm708_vm3, %v5028_v63  ;;  %v620_v14 = vshll.u32 %v5026_v28, 16  ;;  %v624_v18 = vshrl.u32 %v5026_v28, 16 }
  0xa6   : > { %v594_v10 = vrot.slane %v593_v53, 4  ;;  %v1278_v52 = vsel %vm4834_vm7, %v3298_v58, %v1277_v43  ;;  %v1279_v13 = vrot.slane %v1277_v43, 4  ;;  %v613_v25 = vrot.slane %v611_v15, 4  ;;  %v5051_v58 = vld [vmem:[%s4607_s9 + $0xb4] sm:$0xf] }
  0xa7   : > { %v604_v60 = vrot.slane %v603_v61, 4  ;;  %v616_v6 = vrot.slane %v614_v47, 5  ;;  %v622_v63 = vrot.slane %v620_v14, 5  ;;  %v630_v53 = vshll.u32 %v5035_v4, 16 }
  0xa8   : > { %v599_v23 = vsel %vm4656_vm4, %v594_v10, %v598_v37  ;;  %v1281_v44 = vsel %vm4834_vm7, %v1279_v13, %v1280_v3  ;;  %v626_v47 = vrot.slane %v624_v18, 4  ;;  %v3299_v3 = vrot.slane %v4771_v27, 9 }
  0xa9   : > { %v609_v43 = vsel %vm4656_vm4, %v604_v60, %v608_v24  ;;  %v5055_v61 = vcombine.low %v1278_v52, %v1281_v44  ;;  %v617_v15 = vor.u32 %v616_v6, %v613_v25  ;;  %v632_v37 = vrot.slane %v630_v53, 5  ;;  %v5068_v44 = vld [vmem:[%s4607_s9 + $0xbc] sm:$0x1] }
  0xaa   : > { %v5060_v11 = vcombine.low %v599_v23, %v609_v43  ;;  %v1284_v10 = vrot.slane %v4779_v45, 5  ;;  %v627_v14 = vor.u32 %v626_v47, %v622_v63  ;;  %v1287_v24 = vrot.slane %v4791_v55, 5 }
  0xab   : > { %5727 = vst [vmem:[#allocation32_spill] sm:$0xff] %v5055_v61  ;;  %3786 = vmatmul.mubr.msk.bf16.gmra.mrb[8].mxu0 %vm708_vm3, %v5055_v61  ;;  %v618_v13 = vrot.slane %v617_v15, 4  ;;  %v635_v52 = vshrl.u32 %v5051_v58, 16  ;;  %v638_v6 = vshll.u32 %v5051_v58, 16  ;;  %v644_v18 = vshll.u32 %v5058_v50, 16 }
  0xac   : > { %5728 = vst [vmem:[#allocation33_spill] sm:$0xff] %v5060_v11  ;;  %3632 = vmatmul.mubr.msk.bf16.gmra.mrb[24].mxu1 %vm708_vm3, %v5060_v11  ;;  %v1285_v60 = vsel %vm4834_vm7, %v3299_v3, %v1284_v10  ;;  %v1286_v25 = vrot.slane %v1284_v10, 4  ;;  %v628_v53 = vrot.slane %v627_v14, 4  ;;  %v648_v43 = vshrl.u32 %v5058_v50, 16 }
  0xad   : > { %v623_v23 = vsel %vm4656_vm4, %v618_v13, %v622_v63  ;;  %v637_v55 = vrot.slane %v635_v52, 4  ;;  %v640_v47 = vrot.slane %v638_v6, 5  ;;  %v646_v11 = vrot.slane %v644_v18, 5 }
  0xae   : > { %v1288_v15 = vsel %vm4834_vm7, %v1286_v25, %v1287_v24  ;;  %v654_v61 = vshll.u32 %v5068_v44, 16  ;;  %v633_v3 = vsel %vm4656_vm4, %v628_v53, %v632_v37  ;;  %v650_v0 = vrot.slane %v648_v43, 4 }
  0xaf   : > { %v5085_v10 = vcombine.low %v1285_v60, %v1288_v15  ;;  %v3300_v35 = vrot.slane %v4796_v8, 9  ;;  %v5088_v63 = vcombine.low %v623_v23, %v633_v3  ;;  %v641_v13 = vor.u32 %v640_v47, %v637_v55 }
  0xb0   : > { %v656_v14 = vrot.slane %v654_v61, 5  ;;  %v1291_v52 = vrot.slane %v4802_v17, 5  ;;  %v651_v24 = vor.u32 %v650_v0, %v646_v11  ;;  %v1294_v25 = vrot.slane %v4810_v33, 5 }
  0xb1   : > { %3789 = vmatprep.mubr.msk.bf16.mxu0 %vm708_vm3, %v5085_v10  ;;  %v3301_v6 = vrot.slane %v4821_v51, 9  ;;  %v1298_v37 = vrot.slane %v4843_v26, 5  ;;  %3635 = vmatprep.mubr.msk.bf16.mxu1 %vm708_vm3, %v5088_v63  ;;  %v642_v60 = vrot.slane %v641_v13, 4  ;;  %v1301_v23 = vrot.slane %v4852_v32, 5 }
  0xb2   : > { %v1292_v18 = vsel %vm4834_vm7, %v3300_v35, %v1291_v52  ;;  %v1293_v61 = vrot.slane %v1291_v52, 4  ;;  %v652_v53 = vrot.slane %v651_v24, 4  ;;  %v3260_v0 = vcombine.low %v4618_v2, %v4627_v5 }
  0xb3   : > { %v1299_v33 = vsel %vm4834_vm7, %v3301_v6, %v1298_v37  ;;  %v1300_v55 = vrot.slane %v1298_v37, 4  ;;  %v647_v43 = vsel %vm4656_vm4, %v642_v60, %v646_v11  ;;  %v3302_v47 = vrot.slane %v4874_v12, 9 }
  0xb4   : > { %v1295_v15 = vsel %vm4834_vm7, %v1293_v61, %v1294_v25  ;;  %v1305_v35 = vrot.slane %v4881_v56, 5  ;;  %v657_v32 = vsel %vm4656_vm4, %v652_v53, %v656_v14  ;;  %v1308_v5 = vrot.slane %v4898_v46, 5 }
  0xb5   : > { %v5113_v3 = vcombine.low %v1292_v18, %v1295_v15  ;;  %v1302_v2 = vsel %vm4834_vm7, %v1300_v55, %v1301_v23  ;;  %v5118_v13 = vcombine.low %v647_v43, %v657_v32  ;;  %v3303_v14 = vrot.slane %v4912_v54, 9 }
  0xb6   : > { %v5120_v11 = vcombine.low %v1299_v33, %v1302_v2  ;;  %v1307_v52 = vrot.slane %v1305_v35, 4  ;;  %v1306_v24 = vsel %vm4834_vm7, %v3302_v47, %v1305_v35  ;;  %v1312_v25 = vrot.slane %v4925_v40, 5 }
  0xb7   : > { %3790 = vmatmul.mubr.msk.bf16.gmra.mrb[12].mxu0 %vm708_vm3, %v5113_v3  ;;  %v1315_v6 = vrot.slane %v4928_v42, 5  ;;  %3636 = vmatmul.mubr.msk.bf16.gmra.mrb[28].mxu1 %vm708_vm3, %v5118_v13  ;;  %v1319_v37 = vrot.slane %v4958_v49, 5  ;;  %v3304_v42 = vrot.slane %v4947_v31, 9  ;;  %v1322_v33 = vrot.slane %v4967_v38, 5 }
  0xb8   : > { %3793 = vmatprep.mubr.msk.bf16.mxu0 %vm708_vm3, %v5120_v11  ;;  %v1309_v46 = vsel %vm4834_vm7, %v1307_v52, %v1308_v5  ;;  %3641 = vmatprep.mubr.msk.bf16.mxu1 %vm708_vm3, %v3260_v0  ;;  %v1313_v60 = vsel %vm4834_vm7, %v3303_v14, %v1312_v25  ;;  %v1314_v18 = vrot.slane %v1312_v25, 4  ;;  %v1326_v55 = vrot.slane %v4992_v19, 5 }
  0xb9   : > { %v5139_v61 = vcombine.low %v1306_v24, %v1309_v46  ;;  %v1321_v53 = vrot.slane %v1319_v37, 4  ;;  %v5150_v0 = vcombine.low %v4652_v29, %v4665_v39  ;;  %v3305_v15 = vrot.slane %v4985_v21, 9  ;;  %v5163_v39 = vld [vmem:[#allocation5 + $0x6] sm:$0x3] }
  0xba   : > { %v1316_v23 = vsel %vm4834_vm7, %v1314_v18, %v1315_v6  ;;  %v1328_v47 = vrot.slane %v1326_v55, 4  ;;  %v1329_v35 = vrot.slane %v5002_v41, 5  ;;  %v1444_v32 = vsel %vm757_vm0, %v4826_v1, 0 }
  0xbb   : > { %v5146_v43 = vcombine.low %v1313_v60, %v1316_v23  ;;  %v1333_v2 = vrot.slane %v5026_v28, 5  ;;  %v1320_v38 = vsel %vm4834_vm7, %v3304_v42, %v1319_v37  ;;  %v1323_v29 = vsel %vm4834_vm7, %v1321_v53, %v1322_v33 }
  0xbc   : > { %v1340_v1 = vrot.slane %v5058_v50, 5  ;;  %v5174_v41 = vcombine.low %v4682_v57, %v4690_v62  ;;  %v1327_v5 = vsel %vm4834_vm7, %v3305_v15, %v1326_v55  ;;  %v1330_v52 = vsel %vm4834_vm7, %v1328_v47, %v1329_v35 }
  0xbd   : > { %v3306_v24 = vrot.slane %v5018_v20, 9  ;;  %v5181_v14 = vcombine.low %v1320_v38, %v1323_v29  ;;  %v1335_v25 = vrot.slane %v1333_v2, 4  ;;  %v1336_v6 = vrot.slane %v5035_v4, 5 }
  0xbe   : > { %v5186_v46 = vcombine.low %v4821_v51, %v4843_v26  ;;  %v3307_v57 = vrot.slane %v5051_v58, 9  ;;  %v1343_v62 = vrot.slane %v5068_v44, 5  ;;  %v5194_v37 = vcombine.low %v4874_v12, %v4881_v56  ;;  %v5203_v26 = vld [vmem:[%s4607_s9 + $0xc4] sm:$0xf] }
  0xbf   : > { %3794 = vmatmul.mubr.msk.bf16.gmra.mrb[16].mxu0 %vm708_vm3, %v5139_v61  ;;  %3642 = vmatmul.mubr.msk.bf16.vlgmr.msra.gmra.mrb[0].mxu1 %vm708_vm3, %v4662_v34  ;;  %v5198_v60 = vcombine.low %v4912_v54, %v4925_v40  ;;  %v5200_v4 = vcombine.low %v1327_v5, %v1330_v52  ;;  %v1342_v51 = vrot.slane %v1340_v1, 4  ;;  %v5207_v18 = vcombine.low %v4947_v31, %v4958_v49  ;;  %v5230_v49 = vld [vmem:[%s4607_s9 + $0xc0] sm:$0xf] }
  0xc0   : > { %3797 = vmatprep.mubr.msk.bf16.mxu0 %vm708_vm3, %v5146_v43  ;;  %3674 = vmatpush3.bf16.msra.mxu1 %v1444_v32  ;;  %v5211_v44 = vcombine.low %v4985_v21, %v4992_v19  ;;  %v5215_v12 = vcombine.low %v4698_v7, %v4709_v22  ;;  %v5219_v56 = vcombine.low %v5018_v20, %v5026_v28  ;;  %v2076_v31 = vrot.slane %v5203_v26, 5  ;;  %v266_v19 = vld [vmem:[%s4607_s9 + $0xc8] sm:$0x1] }
  0xc1   : > { %3645 = vmatprep.mubr.msk.bf16.mxu1 %vm708_vm3, %v5150_v0  ;;  %4172 = vmatprep.subr.msk.bf16.mxu1 %vm757_vm0, %v5163_v39  ;;  %v5223_v54 = vcombine.low %v5051_v58, %v5058_v50  ;;  %v1334_v40 = vsel %vm4834_vm7, %v3306_v24, %v1333_v2  ;;  %v1337_v7 = vsel %vm4834_vm7, %v1335_v25, %v1336_v6  ;;  %v3374_v20 = vrot.slane %v5230_v49, 9 }
  0xc2   : > { %v1341_v22 = vsel %vm4834_vm7, %v3307_v57, %v1340_v1  ;;  %v1344_v50 = vsel %vm4834_vm7, %v1342_v51, %v1343_v62  ;;  %v5248_v21 = vcombine.low %v4719_v36, %v4729_v48  ;;  %v5251_v28 = vcombine.low %v1334_v40, %v1337_v7 }
  0xc3   : > { %v5253_v58 = vcombine.low %v1341_v22, %v1344_v50  ;;  %v2078_v42 = vrot.slane %v2076_v31, 4  ;;  %v2079_v23 = vrot.slane %v266_v19, 5  ;;  %v1846_v53 = vshrl.u32 %v5230_v49, 16  ;;  %v4270_v22 = vld [vmem:[%s4607_s9] sm:$0xf] }
  0xc4   : > { %v1849_v33 = vshll.u32 %v5230_v49, 16  ;;  %v1855_v55 = vshll.u32 %v5203_v26, 16  ;;  %v1859_v15 = vshrl.u32 %v5203_v26, 16  ;;  %v5261_v36 = vcombine.low %v4743_v59, %v4754_v16 }
  0xc5   : > { %v1848_v48 = vrot.slane %v1846_v53, 4  ;;  %v2077_v2 = vsel %vm4834_vm7, %v3374_v20, %v2076_v31  ;;  %v2080_v59 = vsel %vm4834_vm7, %v2078_v42, %v2079_v23  ;;  %v1865_v29 = vshll.u32 %v266_v19, 16  ;;  %v4269_v31 = vld [vmem:[%s4607_s9 + $0x8] sm:$0x1] }
  0xc6   : > { %v1851_v47 = vrot.slane %v1849_v33, 5  ;;  %v1857_v35 = vrot.slane %v1855_v55, 5  ;;  %v1861_v32 = vrot.slane %v1859_v15, 4  ;;  %v5275_v24 = vcombine.low %v2077_v2, %v2080_v59  ;;  %v5730_v33 = vld [vmem:[#allocation21_spill] sm:$0xff]  ;;  %v5731_v55 = vld [vmem:[#allocation23_spill] sm:$0xff]  ;;  %v5735_v59 = vld [vmem:[#allocation32_spill] sm:$0xff] }
  0xc7   : > { %3798 = vmatmul.mubr.msk.bf16.gmra.mrb[20].mxu0 %vm708_vm3, %v5181_v14  ;;  %3646 = vmatmul.mubr.msk.bf16.gmra.mrb[4].mxu1 %vm708_vm3, %v5174_v41  ;;  %v1867_v52 = vrot.slane %v1865_v29, 5  ;;  %v5279_v25 = vcombine.low %v4771_v27, %v4779_v45  ;;  %v5287_v62 = vcombine.low %v4796_v8, %v4802_v17  ;;  %v5729_v27 = vld [vmem:[#allocation25_spill] sm:$0xff]  ;;  %v1238_v7 = vrot.slane %v4269_v31, 5  ;;  %v4271_v15 = vld [vmem:[#allocation5 + $0x8] sm:$0x3]  ;;  %v5746_v31 = vld [vmem:[#allocation31_spill] sm:$0xff] }
  0xc8   : > { %3801 = vmatprep.mubr.msk.bf16.mxu0 %vm708_vm3, %v5200_v4  ;;  %3649 = vmatprep.mubr.msk.bf16.mxu1 %vm708_vm3, %v5215_v12  ;;  %v1852_v16 = vor.u32 %v1851_v47, %v1848_v48  ;;  %v1862_v38 = vor.u32 %v1861_v32, %v1857_v35  ;;  %v2524_v45 = vsel %vm757_vm0, %v5729_v27, 0  ;;  %v2728_v8 = vld [vmem:[#allocation5 + $0x10] sm:$0x3]  ;;  %v4268_v17 = vld [vmem:[%s4607_s9 + $0x4] sm:$0xf]  ;;  %v3292_v50 = vrot.slane %v4270_v22, 9 }
  0xc9   : > { %v1235_v40 = vrot.slane %v4268_v17, 5  ;;  %v1650_v53 = vsel %vm757_vm0, %v5163_v39, 0  ;;  %v5732_v39 = vld [vmem:[#allocation26_spill] sm:$0xff]  ;;  %v5733_v48 = vld [vmem:[#allocation28_spill] sm:$0xff]  ;;  %v5361_v47 = vcombine.low %v5230_v49, %v5203_v26  ;;  %v5736_v49 = vld [vmem:[#allocation15_spill] sm:$0xff] }
  0xca   : > { %v1853_v1 = vrot.slane %v1852_v16, 4  ;;  %v1863_v5 = vrot.slane %v1862_v38, 4  ;;  %v5370_v32 = vld [vmem:[%s4607_s9 + $0xcc] sm:$0xf]  ;;  %v5373_v2 = vld [vmem:[%s4607_s9 + $0xd0] sm:$0xf] }
  0xcb   : > { %v1237_v19 = vrot.slane %v1235_v40, 4  ;;  %v1236_v20 = vsel %vm4834_vm7, %v3292_v50, %v1235_v40  ;;  %v3392_v26 = vcombine.low %v5370_v32, %v5373_v2  ;;  %v2736_v16 = vsel %vm757_vm0, %v2728_v8, 0  ;;  %v5737_v38 = vld [vmem:[#allocation16_spill] sm:$0xff]  ;;  %v5738_v29 = vld [vmem:[#allocation17_spill] sm:$0xff]  ;;  %v5744_v27 = vld [vmem:[#allocation27_spill] sm:$0xff] }
  0xcc   : > { %v1858_v6 = vsel %vm4656_vm4, %v1853_v1, %v1857_v35  ;;  %v1868_v57 = vsel %vm4656_vm4, %v1863_v5, %v1867_v52  ;;  %v5734_v35 = vld [vmem:[#allocation30_spill] sm:$0xff]  ;;  %v5740_v5 = vld [vmem:[#allocation19_spill] sm:$0xff]  ;;  %v5741_v52 = vld [vmem:[#allocation20_spill] sm:$0xff]  ;;  %v2495_v17 = vshll.u32 %v5370_v32, 16  ;;  %v2505_v40 = vshrl.u32 %v5373_v2, 16 }
  0xcd   : > { %v5289_v51 = vcombine.low %v1858_v6, %v1868_v57  ;;  %v1239_v42 = vsel %vm4834_vm7, %v1237_v19, %v1238_v7  ;;  %v5739_v1 = vld [vmem:[#allocation18_spill] sm:$0xff]  ;;  %v5743_v57 = vld [vmem:[#allocation24_spill] sm:$0xff]  ;;  %v2501_v7 = vshll.u32 %v5373_v2, 16  ;;  %v2722_v30 = vrot.slane %v5373_v2, 5 }
  0xce   : > { %v3308_v23 = vcombine.low %v1236_v20, %v1239_v42  ;;  %v5742_v6 = vld [vmem:[#allocation22_spill] sm:$0xff]  ;;  %v2497_v50 = vrot.slane %v2495_v17, 5  ;;  %v2507_v20 = vrot.slane %v2505_v40, 4 }
  0xcf   : > { %3802 = vmatmul.mubr.msk.bf16.gmra.mrb[24].mxu0 %vm708_vm3, %v5251_v28  ;;  %3650 = vmatmul.mubr.msk.bf16.gmra.mrb[8].mxu1 %vm708_vm3, %v5248_v21  ;;  %v5747_v22 = vld [vmem:[#allocation14_spill] sm:$0xff]  ;;  %v2503_v19 = vrot.slane %v2501_v7, 5 }
  0xd0   : > { %3805 = vmatprep.mubr.msk.bf16.mxu0 %vm708_vm3, %v5253_v58  ;;  %3653 = vmatprep.mubr.msk.bf16.mxu1 %vm708_vm3, %v5261_v36  ;;  %v269_v42 = vld [vmem:[%s4607_s9 + $0xd4] sm:$0x1] }
  0xd7   : > { %3806 = vmatmul.mubr.msk.bf16.gmra.mrb[28].mxu0 %vm708_vm3, %v5275_v24  ;;  %3654 = vmatmul.mubr.msk.bf16.gmra.mrb[12].mxu1 %vm708_vm3, %v5279_v25 }
  0xd8   : > { %3811 = vmatprep.mubr.msk.bf16.mxu0 %vm708_vm3, %v5150_v0  ;;  %3657 = vmatprep.mubr.msk.bf16.mxu1 %vm708_vm3, %v5287_v62 }
  0xdf   : > { %3812 = vmatmul.mubr.msk.bf16.vlgmr.msra.gmra.mrb[0].mxu0 %vm708_vm3, %v5174_v41  ;;  %3658 = vmatmul.mubr.msk.bf16.gmra.mrb[16].mxu1 %vm708_vm3, %v5186_v46 }
  0xe0   : > { %3844 = vmatpush3.bf16.msra.mxu0 %v2524_v45  ;;  %3661 = vmatprep.mubr.msk.bf16.mxu1 %vm708_vm3, %v5194_v37  ;;  %v5745_v45 = vld [vmem:[#allocation29_spill] sm:$0xff] }
  0xe1   : > { %3815 = vmatprep.mubr.msk.bf16.mxu0 %vm708_vm3, %v5215_v12  ;;  %4178 = vmatprep.subr.msk.bf16.mxu0 %vm757_vm0, %v2728_v8  ;;  %v2492_v8 = vshrl.u32 %v5370_v32, 16 }
  0xe7   : > { %3816 = vmatmul.mubr.msk.bf16.gmra.mrb[4].mxu0 %vm708_vm3, %v5248_v21  ;;  %3662 = vmatmul.mubr.msk.bf16.gmra.mrb[20].mxu1 %vm708_vm3, %v5198_v60 }
  0xe8   : > { %3819 = vmatprep.mubr.msk.bf16.mxu0 %vm708_vm3, %v5261_v36  ;;  %3665 = vmatprep.mubr.msk.bf16.mxu1 %vm708_vm3, %v5207_v18 }
  0xef   : > { %3820 = vmatmul.mubr.msk.bf16.gmra.mrb[8].mxu0 %vm708_vm3, %v5279_v25  ;;  %3666 = vmatmul.mubr.msk.bf16.gmra.mrb[24].mxu1 %vm708_vm3, %v5211_v44 }
  0xf0   : > { %3823 = vmatprep.mubr.msk.bf16.mxu0 %vm708_vm3, %v5287_v62  ;;  %3669 = vmatprep.mubr.msk.bf16.mxu1 %vm708_vm3, %v5219_v56 }
  0xf7   : > { %3824 = vmatmul.mubr.msk.bf16.gmra.mrb[12].mxu0 %vm708_vm3, %v5186_v46  ;;  %3670 = vmatmul.mubr.msk.bf16.gmra.mrb[28].mxu1 %vm708_vm3, %v5223_v54 }
  0xf8   : > { %3827 = vmatprep.mubr.msk.bf16.mxu0 %vm708_vm3, %v5194_v37  ;;  %3675 = vmatprep.mubr.msk.bf16.mxu1 %vm708_vm3, %v3308_v23  ;;  %v5748_v23 = vld [vmem:[#allocation33_spill] sm:$0xff] }
  0xff   : > { %3828 = vmatmul.mubr.msk.bf16.gmra.mrb[16].mxu0 %vm708_vm3, %v5198_v60  ;;  %3676 = vmatmul.mubr.msk.bf16.vlgmr.msra.gmra.mrb[0].mxu1 %vm708_vm3, %v5730_v33  ;;  %v2511_v33 = vshll.u32 %v269_v42, 16 }
 0x100   : > { %3831 = vmatprep.mubr.msk.bf16.mxu0 %vm708_vm3, %v5207_v18  ;;  %3708 = vmatpush3.bf16.msra.mxu1 %v1650_v53  ;;  %v2508_v53 = vor.u32 %v2507_v20, %v2503_v19 }
 0x101   : > { %3679 = vmatprep.mubr.msk.bf16.mxu1 %vm708_vm3, %v5731_v55  ;;  %4174 = vmatprep.subr.msk.bf16.mxu1 %vm757_vm0, %v4271_v15 }
 0x102   : > { %v2509_v15 = vrot.slane %v2508_v53, 4 }
 0x107   : > { %3832 = vmatmul.mubr.msk.bf16.gmra.mrb[20].mxu0 %vm708_vm3, %v5211_v44  ;;  %3680 = vmatmul.mubr.msk.bf16.gmra.mrb[4].mxu1 %vm708_vm3, %v5732_v39 }
 0x108   : > { %3835 = vmatprep.mubr.msk.bf16.mxu0 %vm708_vm3, %v5219_v56  ;;  %3683 = vmatprep.mubr.msk.bf16.mxu1 %vm708_vm3, %v5733_v48 }
 0x10f   : > { %3836 = vmatmul.mubr.msk.bf16.gmra.mrb[24].mxu0 %vm708_vm3, %v5223_v54  ;;  %3684 = vmatmul.mubr.msk.bf16.gmra.mrb[8].mxu1 %vm708_vm3, %v5734_v35 }
 0x110   : > { %3839 = vmatprep.mubr.msk.bf16.mxu0 %vm708_vm3, %v5361_v47  ;;  %3687 = vmatprep.mubr.msk.bf16.mxu1 %vm708_vm3, %v5735_v59 }
 0x117   : > { %3840 = vmatmul.mubr.msk.bf16.gmra.mrb[28].mxu0 %vm708_vm3, %v3392_v26  ;;  %3688 = vmatmul.mubr.msk.bf16.gmra.mrb[12].mxu1 %vm708_vm3, %v5085_v10  ;;  %v2513_v26 = vrot.slane %v2511_v33, 5 }
 0x118   : > { %3845 = vmatprep.mubr.msk.bf16.mxu0 %vm708_vm3, %v5736_v49  ;;  %3691 = vmatprep.mubr.msk.bf16.mxu1 %vm708_vm3, %v5113_v3 }
 0x119   : > { %v2514_v49 = vsel %vm4656_vm4, %v2509_v15, %v2513_v26 }
 0x11f   : > { %3846 = vmatmul.mubr.msk.bf16.vlgmr.msra.gmra.mrb[0].mxu0 %vm708_vm3, %v5737_v38  ;;  %3692 = vmatmul.mubr.msk.bf16.gmra.mrb[16].mxu1 %vm708_vm3, %v5120_v11 }
 0x120   : > { %3878 = vmatpush3.bf16.msra.mxu0 %v2736_v16  ;;  %3695 = vmatprep.mubr.msk.bf16.mxu1 %vm708_vm3, %v5139_v61 }
 0x121   : > { %3849 = vmatprep.mubr.msk.bf16.mxu0 %vm708_vm3, %v5738_v29 }
 0x127   : > { %3850 = vmatmul.mubr.msk.bf16.gmra.mrb[4].mxu0 %vm708_vm3, %v5739_v1  ;;  %3696 = vmatmul.mubr.msk.bf16.gmra.mrb[20].mxu1 %vm708_vm3, %v5146_v43 }
 0x128   : > { %3853 = vmatprep.mubr.msk.bf16.mxu0 %vm708_vm3, %v5740_v5  ;;  %3699 = vmatprep.mubr.msk.bf16.mxu1 %vm708_vm3, %v5181_v14 }
 0x12f   : > { %3854 = vmatmul.mubr.msk.bf16.gmra.mrb[8].mxu0 %vm708_vm3, %v5741_v52  ;;  %3700 = vmatmul.mubr.msk.bf16.gmra.mrb[24].mxu1 %vm708_vm3, %v5200_v4 }
 0x130   : > { %3857 = vmatprep.mubr.msk.bf16.mxu0 %vm708_vm3, %v5742_v6  ;;  %3703 = vmatprep.mubr.msk.bf16.mxu1 %vm708_vm3, %v5251_v28 }
 0x137   : > { %3858 = vmatmul.mubr.msk.bf16.gmra.mrb[12].mxu0 %vm708_vm3, %v5743_v57  ;;  %3704 = vmatmul.mubr.msk.bf16.gmra.mrb[28].mxu1 %vm708_vm3, %v5253_v58 }
 0x138   : > { %3861 = vmatprep.mubr.msk.bf16.mxu0 %vm708_vm3, %v5744_v27  ;;  %3709 = vmatprep.mubr.msk.bf16.mxu1 %vm708_vm3, %v4662_v34  ;;  %v2494_v34 = vrot.slane %v2492_v8, 4 }
 0x13f   : > { %3862 = vmatmul.mubr.msk.bf16.gmra.mrb[16].mxu0 %vm708_vm3, %v5745_v45  ;;  %3710 = vmatmul.mubr.msk.bf16.vlgmr.msra.gmra.mrb[0].mxu1 %vm708_vm3, %v5150_v0  ;;  %v2498_v0 = vor.u32 %v2497_v50, %v2494_v34 }
 0x140   : > { %3865 = vmatprep.mubr.msk.bf16.mxu0 %vm708_vm3, %v5746_v31  ;;  %3912 = vmatpush3.bf16.msra.mxu1 %v5747_v22 }
 0x141   : > { %3713 = vmatprep.mubr.msk.bf16.mxu1 %vm708_vm3, %v5174_v41  ;;  %v2499_v41 = vrot.slane %v2498_v0, 4 }
 0x147   : > { %3866 = vmatmul.mubr.msk.bf16.gmra.mrb[20].mxu0 %vm708_vm3, %v5748_v23  ;;  %3714 = vmatmul.mubr.msk.bf16.gmra.mrb[4].mxu1 %vm708_vm3, %v5215_v12  ;;  %v2504_v12 = vsel %vm4656_vm4, %v2499_v41, %v2503_v19 }
 0x148   : > { %3869 = vmatprep.mubr.msk.bf16.mxu0 %vm708_vm3, %v5088_v63  ;;  %3717 = vmatprep.mubr.msk.bf16.mxu1 %vm708_vm3, %v5248_v21  ;;  %v3409_v21 = vcombine.low %v2504_v12, %v2514_v49 }
 0x14f   : > { %3870 = vmatmul.mubr.msk.bf16.gmra.mrb[24].mxu0 %vm708_vm3, %v5118_v13  ;;  %3718 = vmatmul.mubr.msk.bf16.gmra.mrb[8].mxu1 %vm708_vm3, %v5261_v36 }
 0x150   : > { %3873 = vmatprep.mubr.msk.bf16.mxu0 %vm708_vm3, %v5289_v51  ;;  %3721 = vmatprep.mubr.msk.bf16.mxu1 %vm708_vm3, %v5279_v25 }
 0x157   : > { %3874 = vmatmul.mubr.msk.bf16.gmra.mrb[28].mxu0 %vm708_vm3, %v3409_v21  ;;  %3722 = vmatmul.mubr.msk.bf16.gmra.mrb[12].mxu1 %vm708_vm3, %v5287_v62 }
 0x158   : > { %3879 = vmatprep.mubr.msk.bf16.mxu0 %vm708_vm3, %v5731_v55  ;;  %3725 = vmatprep.mubr.msk.bf16.mxu1 %vm708_vm3, %v5186_v46 }
 0x15f   : > { %3880 = vmatmul.mubr.msk.bf16.vlgmr.msra.gmra.mrb[0].mxu0 %vm708_vm3, %v5732_v39  ;;  %3726 = vmatmul.mubr.msk.bf16.gmra.mrb[16].mxu1 %vm708_vm3, %v5194_v37 }
 0x160   : > { %3883 = vmatprep.mubr.msk.bf16.mxu0 %vm708_vm3, %v5733_v48  ;;  %3729 = vmatprep.mubr.msk.bf16.mxu1 %vm708_vm3, %v5198_v60 }
 0x167   : > { %3884 = vmatmul.mubr.msk.bf16.gmra.mrb[4].mxu0 %vm708_vm3, %v5734_v35  ;;  %3730 = vmatmul.mubr.msk.bf16.gmra.mrb[20].mxu1 %vm708_vm3, %v5207_v18 }
 0x168   : > { %3887 = vmatprep.mubr.msk.bf16.mxu0 %vm708_vm3, %v5735_v59  ;;  %3733 = vmatprep.mubr.msk.bf16.mxu1 %vm708_vm3, %v5211_v44 }
 0x16f   : > { %3888 = vmatmul.mubr.msk.bf16.gmra.mrb[8].mxu0 %vm708_vm3, %v5085_v10  ;;  %3734 = vmatmul.mubr.msk.bf16.gmra.mrb[24].mxu1 %vm708_vm3, %v5219_v56  ;;  %v3426_v10 = vrot.slane %v5370_v32, 9 }
 0x170   : > { %3891 = vmatprep.mubr.msk.bf16.mxu0 %vm708_vm3, %v5113_v3  ;;  %3737 = vmatprep.mubr.msk.bf16.mxu1 %vm708_vm3, %v5223_v54  ;;  %v2724_v3 = vrot.slane %v2722_v30, 4 }
 0x177   : > { %3892 = vmatmul.mubr.msk.bf16.gmra.mrb[12].mxu0 %vm708_vm3, %v5120_v11  ;;  %3738 = vmatmul.mubr.msk.bf16.gmra.mrb[28].mxu1 %vm708_vm3, %v5361_v47  ;;  %v2725_v11 = vrot.slane %v269_v42, 5 }
 0x178   : > { %3895 = vmatprep.mubr.msk.bf16.mxu0 %vm708_vm3, %v5139_v61  ;;  %3759 = vmatprep.mubr.msk.bf16.mxu1 %vm708_vm3, %v5743_v57  ;;  %v2723_v61 = vsel %vm4834_vm7, %v3426_v10, %v2722_v30 }
 0x17f   : > { %3896 = vmatmul.mubr.msk.bf16.gmra.mrb[16].mxu0 %vm708_vm3, %v5146_v43  ;;  %3760 = vmatmul.mubr.msk.bf16.vlgmr.msra.gmra.mrb[16].mxu1 %vm708_vm3, %v5744_v27  ;;  %v2726_v43 = vsel %vm4834_vm7, %v2724_v3, %v2725_v11 }
 0x180   : > { %3899 = vmatprep.mubr.msk.bf16.mxu0 %vm708_vm3, %v5181_v14  ;;  %3763 = vmatprep.mubr.msk.bf16.mxu1 %vm708_vm3, %v5745_v45  ;;  %v3427_v14 = vcombine.low %v2723_v61, %v2726_v43 }
 0x187   : > { %3900 = vmatmul.mubr.msk.bf16.gmra.mrb[20].mxu0 %vm708_vm3, %v5200_v4  ;;  %3764 = vmatmul.mubr.msk.bf16.gmra.mrb[20].mxu1 %vm708_vm3, %v5746_v31 }
 0x188   : > { %3903 = vmatprep.mubr.msk.bf16.mxu0 %vm708_vm3, %v5251_v28  ;;  %3767 = vmatprep.mubr.msk.bf16.mxu1 %vm708_vm3, %v5748_v23 }
 0x18f   : > { %3904 = vmatmul.mubr.msk.bf16.gmra.mrb[24].mxu0 %vm708_vm3, %v5253_v58  ;;  %3768 = vmatmul.mubr.msk.bf16.gmra.mrb[24].mxu1 %vm708_vm3, %v5088_v63 }
 0x190   : > { %3907 = vmatprep.mubr.msk.bf16.mxu0 %vm708_vm3, %v5275_v24  ;;  %3771 = vmatprep.mubr.msk.bf16.mxu1 %vm708_vm3, %v5118_v13 }
 0x197   : > { %3908 = vmatmul.mubr.msk.bf16.gmra.mrb[28].mxu0 %vm708_vm3, %v3427_v14  ;;  %3772 = vmatmul.mubr.msk.bf16.gmra.mrb[28].mxu1 %vm708_vm3, %v5289_v51 }
 0x212   : > { %v3711_v46 = vpop.f32.mrb[0].mxu1 }
 0x213   : > { %v1686_v63 = vpop.f32.mrb[1].mxu1 }
 0x214   : > { %v3712_v37 = vpop.f32.mrb[2].mxu1 }
 0x215   : > { %v1689_v60 = vpop.f32.mrb[3].mxu1 }
 0x21a   : > { %v3715_v4 = vpop.f32.mrb[4].mxu1 }
 0x21b   : > { %v1702_v18 = vpop.f32.mrb[5].mxu1 }
 0x21c   : > { %v3716_v44 = vpop.f32.mrb[6].mxu1 }
 0x21d   : > { %v1705_v56 = vpop.f32.mrb[7].mxu1 }
 0x222   : > { %v3719_v9 = vpop.f32.mrb[8].mxu1 }
 0x223   : > { %v1718_v54 = vpop.f32.mrb[9].mxu1 }
 0x224   : > { %v3720_v28 = vpop.f32.mrb[10].mxu1 }
 0x225   : > { %v5525_v58 = vpop.f32.mrb[11].mxu1 }
 0x22a   : > { %v5527_v13 = vpop.f32.mrb[12].mxu1 }
 0x22b   : > { %v5529_v36 = vpop.f32.mrb[13].mxu1 }
 0x22c   : > { %v5531_v24 = vpop.f32.mrb[14].mxu1 }
 0x22d   : > { %v5533_v25 = vpop.f32.mrb[15].mxu1 }
 0x232   : > { %v3881_v62 = vpop.f32.mrb[0].mxu0 }
 0x233   : > { %v3913_v51 = vadd.f32 %v3881_v62, %v3711_v46  ;;  %v2772_v55 = vpop.f32.mrb[1].mxu0 }
 0x234   : > { %v3914_v39 = vadd.f32 %v2772_v55, %v1686_v63  ;;  %v3882_v48 = vpop.f32.mrb[2].mxu0 }
 0x235   : > { %2933 = vst [vmem:[%s5536_s20 + $0x10] sm:$0xff] %v3913_v51  ;;  %v3915_v47 = vadd.f32 %v3882_v48, %v3712_v37  ;;  %v2775_v35 = vpop.f32.mrb[3].mxu0  ;;  %v3002_v38 = vmul.f32 %v3913_v51, %v3913_v51 }
 0x236   : > { %2931 = vst [vmem:[%s5536_s20] sm:$0xff] %v3914_v39  ;;  %v3916_v32 = vadd.f32 %v2775_v35, %v1689_v60  ;;  %v3000_v2 = vmul.f32 %v3914_v39, %v3914_v39 }
 0x237   : > { %2934 = vst [vmem:[%s5536_s20 + $0x18] sm:$0xff] %v3915_v47  ;;  %v3003_v57 = vmul.f32 %v3915_v47, %v3915_v47 }
 0x238   : > { %2932 = vst [vmem:[%s5536_s20 + $0x8] sm:$0xff] %v3916_v32  ;;  %v2963_v59 = vadd.f32 %v3916_v32, %v3914_v39  ;;  %v3001_v16 = vmul.f32 %v3916_v32, %v3916_v32 }
 0x23a   : > { %v2964_v29 = vadd.f32 %v3913_v51, %v2963_v59  ;;  %v3032_v1 = vadd.f32 %v3001_v16, %v3000_v2  ;;  %v3885_v5 = vpop.f32.mrb[4].mxu0 }
 0x23b   : > { %v3917_v52 = vadd.f32 %v3885_v5, %v3715_v4  ;;  %v2788_v6 = vpop.f32.mrb[5].mxu0 }
 0x23c   : > { %v3033_v27 = vadd.f32 %v3032_v1, %v3002_v38  ;;  %v3918_v45 = vadd.f32 %v2788_v6, %v1702_v18  ;;  %v2965_v8 = vadd.f32 %v3915_v47, %v2964_v29  ;;  %v3886_v17 = vpop.f32.mrb[6].mxu0 }
 0x23d   : > { %2937 = vst [vmem:[%s5536_s20 + $0x30] sm:$0xff] %v3917_v52  ;;  %v3919_v40 = vadd.f32 %v3886_v17, %v3716_v44  ;;  %v2791_v31 = vpop.f32.mrb[7].mxu0  ;;  %v3006_v23 = vmul.f32 %v3917_v52, %v3917_v52 }
 0x23e   : > { %2935 = vst [vmem:[%s5536_s20 + $0x20] sm:$0xff] %v3918_v45  ;;  %v2966_v7 = vadd.f32 %v3918_v45, %v2965_v8  ;;  %v3004_v22 = vmul.f32 %v3918_v45, %v3918_v45  ;;  %v3034_v34 = vadd.f32 %v3033_v27, %v3003_v57  ;;  %v3920_v50 = vadd.f32 %v2791_v31, %v1705_v56 }
 0x23f   : > { %2938 = vst [vmem:[%s5536_s20 + $0x38] sm:$0xff] %v3919_v40  ;;  %v3007_v26 = vmul.f32 %v3919_v40, %v3919_v40 }
 0x240   : > { %v3035_v19 = vadd.f32 %v3034_v34, %v3004_v22  ;;  %2936 = vst [vmem:[%s5536_s20 + $0x28] sm:$0xff] %v3920_v50  ;;  %v2967_v20 = vadd.f32 %v3920_v50, %v2966_v7  ;;  %v3005_v42 = vmul.f32 %v3920_v50, %v3920_v50 }
 0x242   : > { %v2968_v0 = vadd.f32 %v3917_v52, %v2967_v20  ;;  %v3036_v53 = vadd.f32 %v3035_v19, %v3005_v42  ;;  %v3889_v33 = vpop.f32.mrb[8].mxu0 }
 0x243   : > { %v3921_v41 = vadd.f32 %v3889_v33, %v3719_v9  ;;  %v2804_v15 = vpop.f32.mrb[9].mxu0 }
 0x244   : > { %v3037_v12 = vadd.f32 %v3036_v53, %v3006_v23  ;;  %v3922_v49 = vadd.f32 %v2804_v15, %v1718_v54  ;;  %v2969_v21 = vadd.f32 %v3919_v40, %v2968_v0  ;;  %v3890_v30 = vpop.f32.mrb[10].mxu0 }
 0x245   : > { %2941 = vst [vmem:[%s5536_s20 + $0x50] sm:$0xff] %v3921_v41  ;;  %v3923_v10 = vadd.f32 %v3890_v30, %v3720_v28  ;;  %v2807_v3 = vpop.f32.mrb[11].mxu0  ;;  %v3010_v60 = vmul.f32 %v3921_v41, %v3921_v41 }
 0x246   : > { %2939 = vst [vmem:[%s5536_s20 + $0x40] sm:$0xff] %v3922_v49  ;;  %v2970_v11 = vadd.f32 %v3922_v49, %v2969_v21  ;;  %v3008_v61 = vmul.f32 %v3922_v49, %v3922_v49  ;;  %v3038_v43 = vadd.f32 %v3037_v12, %v3007_v26  ;;  %v3924_v14 = vadd.f32 %v2807_v3, %v5525_v58 }
 0x247   : > { %2942 = vst [vmem:[%s5536_s20 + $0x58] sm:$0xff] %v3923_v10  ;;  %v3011_v54 = vmul.f32 %v3923_v10, %v3923_v10 }
 0x248   : > { %v3039_v46 = vadd.f32 %v3038_v43, %v3008_v61  ;;  %2940 = vst [vmem:[%s5536_s20 + $0x48] sm:$0xff] %v3924_v14  ;;  %v2971_v63 = vadd.f32 %v3924_v14, %v2970_v11  ;;  %v3009_v37 = vmul.f32 %v3924_v14, %v3924_v14 }
 0x24a   : > { %v2972_v4 = vadd.f32 %v3921_v41, %v2971_v63  ;;  %v3040_v18 = vadd.f32 %v3039_v46, %v3009_v37  ;;  %v3893_v44 = vpop.f32.mrb[12].mxu0 }
 0x24b   : > { %v3925_v56 = vadd.f32 %v3893_v44, %v5527_v13  ;;  %v2820_v9 = vpop.f32.mrb[13].mxu0 }
 0x24c   : > { %v3041_v28 = vadd.f32 %v3040_v18, %v3010_v60  ;;  %v3926_v58 = vadd.f32 %v2820_v9, %v5529_v36  ;;  %v2973_v62 = vadd.f32 %v3923_v10, %v2972_v4  ;;  %v3894_v51 = vpop.f32.mrb[14].mxu0 }
 0x24d   : > { %2945 = vst [vmem:[%s5536_s20 + $0x70] sm:$0xff] %v3925_v56  ;;  %v3927_v55 = vadd.f32 %v3894_v51, %v5531_v24  ;;  %v2823_v39 = vpop.f32.mrb[15].mxu0  ;;  %v3014_v16 = vmul.f32 %v3925_v56, %v3925_v56 }
 0x24e   : > { %2943 = vst [vmem:[%s5536_s20 + $0x60] sm:$0xff] %v3926_v58  ;;  %v2974_v48 = vadd.f32 %v3926_v58, %v2973_v62  ;;  %v3012_v47 = vmul.f32 %v3926_v58, %v3926_v58  ;;  %v3042_v35 = vadd.f32 %v3041_v28, %v3011_v54  ;;  %v3928_v32 = vadd.f32 %v2823_v39, %v5533_v25 }
 0x24f   : > { %2946 = vst [vmem:[%s5536_s20 + $0x78] sm:$0xff] %v3927_v55  ;;  %v3015_v5 = vmul.f32 %v3927_v55, %v3927_v55 }
 0x250   : > { %v3043_v13 = vadd.f32 %v3042_v35, %v3012_v47  ;;  %2944 = vst [vmem:[%s5536_s20 + $0x68] sm:$0xff] %v3928_v32  ;;  %v2975_v2 = vadd.f32 %v3928_v32, %v2974_v48  ;;  %v3013_v59 = vmul.f32 %v3928_v32, %v3928_v32 }
 0x252   : > { %v2976_v36 = vadd.f32 %v3925_v56, %v2975_v2  ;;  %v3044_v38 = vadd.f32 %v3043_v13, %v3013_v59  ;;  %v3897_v29 = vpop.f32.mrb[16].mxu0  ;;  %v3761_v1 = vpop.f32.mrb[16].mxu1 }
 0x253   : > { %v2836_v24 = vpop.f32.mrb[17].mxu0  ;;  %v3929_v6 = vadd.f32 %v3897_v29, %v3761_v1  ;;  %v1978_v57 = vpop.f32.mrb[17].mxu1 }
 0x254   : > { %v3045_v52 = vadd.f32 %v3044_v38, %v3014_v16  ;;  %v2977_v25 = vadd.f32 %v3927_v55, %v2976_v36  ;;  %v3898_v27 = vpop.f32.mrb[18].mxu0  ;;  %v3930_v45 = vadd.f32 %v2836_v24, %v1978_v57  ;;  %v3762_v8 = vpop.f32.mrb[18].mxu1 }
 0x255   : > { %v2839_v17 = vpop.f32.mrb[19].mxu0  ;;  %2949 = vst [vmem:[%s5536_s20 + $0x90] sm:$0xff] %v3929_v6  ;;  %v3931_v31 = vadd.f32 %v3898_v27, %v3762_v8  ;;  %v1981_v7 = vpop.f32.mrb[19].mxu1  ;;  %v3018_v0 = vmul.f32 %v3929_v6, %v3929_v6 }
 0x256   : > { %v3046_v40 = vadd.f32 %v3045_v52, %v3015_v5  ;;  %2947 = vst [vmem:[%s5536_s20 + $0x80] sm:$0xff] %v3930_v45  ;;  %v2978_v22 = vadd.f32 %v3930_v45, %v2977_v25  ;;  %v3016_v34 = vmul.f32 %v3930_v45, %v3930_v45  ;;  %v3932_v50 = vadd.f32 %v2839_v17, %v1981_v7 }
 0x257   : > { %2950 = vst [vmem:[%s5536_s20 + $0x98] sm:$0xff] %v3931_v31  ;;  %v3019_v21 = vmul.f32 %v3931_v31, %v3931_v31 }
 0x258   : > { %v3047_v19 = vadd.f32 %v3046_v40, %v3016_v34  ;;  %2948 = vst [vmem:[%s5536_s20 + $0x88] sm:$0xff] %v3932_v50  ;;  %v2979_v20 = vadd.f32 %v3932_v50, %v2978_v22  ;;  %v3017_v42 = vmul.f32 %v3932_v50, %v3932_v50 }
 0x25a   : > { %v3901_v23 = vpop.f32.mrb[20].mxu0  ;;  %v2980_v53 = vadd.f32 %v3929_v6, %v2979_v20  ;;  %v3048_v33 = vadd.f32 %v3047_v19, %v3017_v42  ;;  %v3765_v41 = vpop.f32.mrb[20].mxu1 }
 0x25b   : > { %v2852_v15 = vpop.f32.mrb[21].mxu0  ;;  %v3933_v26 = vadd.f32 %v3901_v23, %v3765_v41  ;;  %v1994_v12 = vpop.f32.mrb[21].mxu1 }
 0x25c   : > { %v3902_v49 = vpop.f32.mrb[22].mxu0  ;;  %v3049_v30 = vadd.f32 %v3048_v33, %v3018_v0  ;;  %v3934_v10 = vadd.f32 %v2852_v15, %v1994_v12  ;;  %v2981_v3 = vadd.f32 %v3931_v31, %v2980_v53  ;;  %v3766_v11 = vpop.f32.mrb[22].mxu1 }
 0x25d   : > { %v2855_v61 = vpop.f32.mrb[23].mxu0  ;;  %2953 = vst [vmem:[%s5536_s20 + $0xb0] sm:$0xff] %v3933_v26  ;;  %v3935_v43 = vadd.f32 %v3902_v49, %v3766_v11  ;;  %v1997_v14 = vpop.f32.mrb[23].mxu1  ;;  %v3022_v9 = vmul.f32 %v3933_v26, %v3933_v26 }
 0x25e   : > { %2951 = vst [vmem:[%s5536_s20 + $0xa0] sm:$0xff] %v3934_v10  ;;  %v2982_v46 = vadd.f32 %v3934_v10, %v2981_v3  ;;  %v3020_v63 = vmul.f32 %v3934_v10, %v3934_v10  ;;  %v3050_v37 = vadd.f32 %v3049_v30, %v3019_v21  ;;  %v3936_v60 = vadd.f32 %v2855_v61, %v1997_v14 }
 0x25f   : > { %2954 = vst [vmem:[%s5536_s20 + $0xb8] sm:$0xff] %v3935_v43  ;;  %v3023_v48 = vmul.f32 %v3935_v43, %v3935_v43 }
 0x260   : > { %v3051_v4 = vadd.f32 %v3050_v37, %v3020_v63  ;;  %2952 = vst [vmem:[%s5536_s20 + $0xa8] sm:$0xff] %v3936_v60  ;;  %v2983_v18 = vadd.f32 %v3936_v60, %v2982_v46  ;;  %v3021_v44 = vmul.f32 %v3936_v60, %v3936_v60 }
 0x262   : > { %v3905_v56 = vpop.f32.mrb[24].mxu0  ;;  %v2984_v54 = vadd.f32 %v3933_v26, %v2983_v18  ;;  %v3052_v28 = vadd.f32 %v3051_v4, %v3021_v44  ;;  %v3769_v58 = vpop.f32.mrb[24].mxu1 }
 0x263   : > { %v2868_v62 = vpop.f32.mrb[25].mxu0  ;;  %v3937_v51 = vadd.f32 %v3905_v56, %v3769_v58  ;;  %v2010_v55 = vpop.f32.mrb[25].mxu1 }
 0x264   : > { %v3906_v39 = vpop.f32.mrb[26].mxu0  ;;  %v3053_v47 = vadd.f32 %v3052_v28, %v3022_v9  ;;  %v3938_v35 = vadd.f32 %v2868_v62, %v2010_v55  ;;  %v2985_v32 = vadd.f32 %v3935_v43, %v2984_v54  ;;  %v3770_v13 = vpop.f32.mrb[26].mxu1 }
 0x265   : > { %v2871_v2 = vpop.f32.mrb[27].mxu0  ;;  %2957 = vst [vmem:[%s5536_s20 + $0xd0] sm:$0xff] %v3937_v51  ;;  %v3939_v59 = vadd.f32 %v3906_v39, %v3770_v13  ;;  %v2013_v16 = vpop.f32.mrb[27].mxu1  ;;  %v3026_v57 = vmul.f32 %v3937_v51, %v3937_v51 }
 0x266   : > { %2955 = vst [vmem:[%s5536_s20 + $0xc0] sm:$0xff] %v3938_v35  ;;  %v2986_v36 = vadd.f32 %v3938_v35, %v2985_v32  ;;  %v3024_v38 = vmul.f32 %v3938_v35, %v3938_v35  ;;  %v3054_v29 = vadd.f32 %v3053_v47, %v3023_v48  ;;  %v3940_v1 = vadd.f32 %v2871_v2, %v2013_v16 }
 0x267   : > { %2958 = vst [vmem:[%s5536_s20 + $0xd8] sm:$0xff] %v3939_v59  ;;  %v3027_v7 = vmul.f32 %v3939_v59, %v3939_v59 }
 0x268   : > { %v3055_v24 = vadd.f32 %v3054_v29, %v3024_v38  ;;  %2956 = vst [vmem:[%s5536_s20 + $0xc8] sm:$0xff] %v3940_v1  ;;  %v2987_v5 = vadd.f32 %v3940_v1, %v2986_v36  ;;  %v3025_v52 = vmul.f32 %v3940_v1, %v3940_v1 }
 0x26a   : > { %v3909_v6 = vpop.f32.mrb[28].mxu0  ;;  %v2988_v25 = vadd.f32 %v3937_v51, %v2987_v5  ;;  %v3056_v27 = vadd.f32 %v3055_v24, %v3025_v52  ;;  %v3773_v45 = vpop.f32.mrb[28].mxu1 }
 0x26b   : > { %v2884_v8 = vpop.f32.mrb[29].mxu0  ;;  %v3941_v17 = vadd.f32 %v3909_v6, %v3773_v45  ;;  %v2026_v40 = vpop.f32.mrb[29].mxu1 }
 0x26c   : > { %v3910_v31 = vpop.f32.mrb[30].mxu0  ;;  %v3057_v22 = vadd.f32 %v3056_v27, %v3026_v57  ;;  %v3942_v34 = vadd.f32 %v2884_v8, %v2026_v40  ;;  %v2989_v50 = vadd.f32 %v3939_v59, %v2988_v25  ;;  %v3774_v19 = vpop.f32.mrb[30].mxu1 }
 0x26d   : > { %v2887_v20 = vpop.f32.mrb[31].mxu0  ;;  %2961 = vst [vmem:[%s5536_s20 + $0xf0] sm:$0xff] %v3941_v17  ;;  %v3943_v42 = vadd.f32 %v3910_v31, %v3774_v19  ;;  %v2029_v23 = vpop.f32.mrb[31].mxu1 }
 0x26e   : > { %2959 = vst [vmem:[%s5536_s20 + $0xe0] sm:$0xff] %v3942_v34  ;;  %v2990_v0 = vadd.f32 %v3942_v34, %v2989_v50  ;;  %v3028_v53 = vmul.f32 %v3942_v34, %v3942_v34  ;;  %v3058_v33 = vadd.f32 %v3057_v22, %v3027_v7  ;;  %v3944_v41 = vadd.f32 %v2887_v20, %v2029_v23 }
 0x26f   : > { %2962 = vst [vmem:[%s5536_s20 + $0xf8] sm:$0xff] %v3943_v42 }
 0x270   : > { %v3059_v15 = vadd.f32 %v3058_v33, %v3028_v53  ;;  %2960 = vst [vmem:[%s5536_s20 + $0xe8] sm:$0xff] %v3944_v41  ;;  %v2991_v26 = vadd.f32 %v3944_v41, %v2990_v0  ;;  %v3029_v12 = vmul.f32 %v3944_v41, %v3944_v41 }
 0x271   : > { %4343 = shalt.err (!%p4340_p7)
}
 0x272   : > { %s4344_s30 = scalar_lea.hbm %s5577_s10, 4096  ;;  %s4348_s8 = scalar_lea.hbm %s5659_s2, 8192 }
 0x273   : > { %p4345_p9 = scmp.ne.s32.totalorder %s5577_s10, %s4344_s30  ;;  %p4349_p5 = scmp.lt.u32.totalorder %s5577_s10, %s5659_s2 }
 0x274   : > { %p4350_p11 = scmp.lt.u32.totalorder %s4348_s8, %s4344_s30  ;;  %p4352_p4 = scmp.lt.u32.totalorder %s4344_s30, %s5577_s10 }
 0x275   : > { %p4346_p2 = pnand %p4345_p9, %p4555_p12 }
 0x276   : > { %p4351_p1 = por %p4350_p11, %p4349_p5 }
 0x277   : > { %p4347_p0 = pneg %p4346_p2 }
 0x278   : > { %p4353_p6 = por %p4352_p4, %p4351_p1 }
 0x27a   : > { %p4354_p8 = pnand %p4353_p6, %p4347_p0 }
 0x27c   : > { %4357 = shalt.err (!%p4354_p8)
}
 0x27d   : > { %s4441_s20 = smov 128   ;;  %s4442_s4 = smov 8   ;;  %v3030_v49 = vmul.f32 %v3941_v17, %v3941_v17  ;;  %v2992_v21 = vadd.f32 %v3941_v17, %v2991_v26  ;;  %v3060_v30 = vadd.f32 %v3059_v15, %v3029_v12  ;;  %v3031_v10 = vmul.f32 %v3943_v42, %v3943_v42 }
 0x27e   : > { %4188 = dma.vmem_to_hbm [thread:$0]  (%p4555_p12), %s5579_s22, 4096, %s5577_s10, %s3073_s11, %s4441_s20, %s4441_s20, %s4442_s4   ;;  %vm3069_vm8 = vcmask 1040384  }
 0x27f   : > { %v2993_v3 = vadd.f32 %v3943_v42, %v2992_v21  ;;  %v3061_v11 = vadd.f32 %v3060_v30, %v3030_v49  ;;  %s3227_s26 = sshll.u32 %s4603_s6, 1  ;;  %s3448_s22 = sshll.u32 %s4485_s16, 5 }
 0x280   : > { %s214_s5 = scalar_lea.vmem [#allocation8], %s3227_s26  ;;  %s5613_s28 = scalar_lea.hbm %s5660_s3, %s3448_s22 }
 0x281   : > { %v2994_v61 = vrot.slane %v2993_v3, 4  ;;  %v3062_v43 = vadd.f32 %v3061_v11, %v3031_v10  ;;  %s3107_s10 = sshll.u32 %s214_s5, 4  ;;  %s3078_s29 = scalar_lea.sflag [#allocation9], %s4603_s6  ;;  %s5615_s10 = int_to_ptr.vmem [resolvable:$true] %s3107_s10 }
 0x282   : > { %s4358_s23 = scalar_lea.vmem %s5615_s10, 32  ;;  %s4443_s16 = smov [#allocation8]  }
 0x283   : > { %v2995_v14 = vadd.f32 %v2994_v61, %v2993_v3  ;;  %v3063_v46 = vrot.slane %v3062_v43, 4  ;;  %p4359_p10 = scmp.ne.s32.totalorder %s5615_s10, %s4358_s23  ;;  %s4362_s30 = sshll.u32 %s4443_s16, 4  ;;  %s4363_s30 = int_to_ptr.vmem [resolvable:$false] %s4362_s30 }
 0x284   : > { %s4364_s25 = scalar_lea.vmem %s4363_s30, 64  ;;  %p4365_p7 = scmp.lt.s32.totalorder %s5615_s10, %s4363_s30 }
 0x285   : > { %v2996_v63 = vrot.slane %v2995_v14, 2  ;;  %v3064_v37 = vadd.f32 %v3063_v46, %v3062_v43  ;;  %p4360_p13 = pnand %p4359_p10, %p4555_p12  ;;  %p4366_p9 = scmp.lt.s32.totalorder %s4364_s25, %s4358_s23 }
 0x287   : > { %v2997_v60 = vadd.f32 %v2996_v63, %v2995_v14  ;;  %v3065_v4 = vrot.slane %v3064_v37, 2  ;;  %p4361_p3 = pneg %p4360_p13  ;;  %p4367_p2 = por %p4366_p9, %p4365_p7 }
 0x289   : > { %v2998_v18 = vrot.slane %v2997_v60, 1  ;;  %v3066_v44 = vadd.f32 %v3065_v4, %v3064_v37  ;;  %p4368_p0 = pnand %p4367_p2, %p4361_p3 }
 0x28b   : > { %v3067_v56 = vrot.slane %v3066_v44, 1  ;;  %v2999_v9 = vadd.f32 %v2998_v18, %v2997_v60 }
 0x28d   : > { %v3068_v54 = vadd.f32 %v3067_v56, %v3066_v44 }
 0x28f   : > { %v3070_v28 = vsel %vm3069_vm8, %v2999_v9, %v3068_v54 }
 0x290   : > { %3071 = vst [vmem:[%s214_s5] sm:$0x3] %v3070_v28 }
 0x291   : > { %4371 = shalt.err (!%p4368_p0)
}
 0x292   : > { %s4372_s6 = scalar_lea.hbm %s5613_s28, 32  ;;  %s4376_s9 = scalar_lea.hbm %s5660_s3, 64 }
 0x293   : > { %p4373_p5 = scmp.ne.s32.totalorder %s5613_s28, %s4372_s6  ;;  %p4377_p4 = scmp.lt.u32.totalorder %s5613_s28, %s5660_s3 }
 0x294   : > { %p4378_p6 = scmp.lt.u32.totalorder %s4376_s9, %s4372_s6  ;;  %p4380_p10 = scmp.lt.u32.totalorder %s4372_s6, %s5613_s28 }
 0x295   : > { %p4374_p11 = pnand %p4373_p5, %p4555_p12 }
 0x296   : > { %p4379_p8 = por %p4378_p6, %p4377_p4 }
 0x297   : > { %p4375_p1 = pneg %p4374_p11 }
 0x298   : > { %p4381_p13 = por %p4380_p10, %p4379_p8 }
 0x29a   : > { %p4382_p3 = pnand %p4381_p13, %p4375_p1 }
 0x29c   : > { %4385 = shalt.err (!%p4382_p3)
}
 0x29d   : > { %4189 = dma.vmem_to_hbm [thread:$0]  (%p4555_p12), %s5615_s10, 32, %s5613_s28, %s3078_s29  }
 0x29e PF: > { %s3119_s4 = sand.u32 1, %s4420_s12   ;;  %p5749_p7 = scmp.ne.s32.totalorder %s5695_s19, 0 }
 0x29f   : > { %p5750_p9 = scmp.ge.s32.totalorder %s4432_s15, 2  ;;  %s3120_s26 = scalar_lea.sflag [#allocation4], %s3119_s4 }
 0x2a1   : > { %p4201_p2 = pnand %p5750_p9, %p5749_p7 }
 0x2a3   : > { %4411 = dma.done.wait (!%p4201_p2), %s3120_s26, 4096  }
 0x2a4   : > { %4413 = vsyncadd (!%p4201_p2), %s3120_s26, 4294963200  ;;  %s3129_s22 = scalar_lea.sflag [#allocation9], %s3119_s4 }
 0x2a5   : > { %4415 = dma.done.wait (!%p4201_p2), %s3129_s22, 32  }
 0x2a6   : > { %4417 = vsyncadd (!%p4201_p2), %s3129_s22, 4294967264  ;;  %p21_p12 = scmp.ge.s32.totalorder %s4520_s24, 4   ;;  %s5751_s12 = smov %s4424_s13 }
 0x2a7   : > { %s5752_s13 = smov %s4428_s14  ;;  %s5753_s14 = smov %s4551_s17 }
 0x2a8   : > { %s5754_s15 = smov %s4520_s24  ;;  %23 = sbr.rel (!%p21_p12) target bundleno = 8 (0x8), region = 102 }
 0x2af   :  { %3134 = vsyncpa [#allocation3], 1 }
 0x2b0   :  { %3136 = vsyncpa [#allocation3 + $0x1], 1 }
 0x2b1   :  { %3137 = vsyncpa [#allocation6], 1 }
 0x2b2   :  { %3138 = vsyncpa [#allocation4], 1 }
 0x2b3   :  { %3140 = vsyncpa [#allocation4 + $0x1], 1 }
 0x2b4   :  { %3141 = vsyncpa [#allocation9], 1 }
 0x2b5   :  { %3143 = vsyncpa [#allocation9 + $0x1], 1 }

</bundles_post_ra>
